<compile_context>
chip_gen: v7x
topology: tpu7x:2x2x1
jax: 0.10.0
libtpu: 0.0.40
codegen_flags: <defaults>
</compile_context>

<pallas_src>
import functools

import jax
import jax.numpy as jnp
from jax.experimental import pallas as pl
from jax.experimental.pallas import tpu as pltpu


def _round_up(n, m):
    return ((n + m - 1) // m) * m


# ---------------------------------------------------------------------------
# Fused kernel: (x_flat @ Wb + bb) -> (@ Wfc + bfc) -> log_softmax(axis=1)
# ---------------------------------------------------------------------------
def _cls_end_fused_kernel(x_ref, wb_ref, bb_ref, wfc_ref, bfc_ref, o_ref, *, num_cls):
    # x_ref  : (TILE_B, K1_pad)  f32     (flattened NCHW input tile)
    # wb_ref : (K1_pad, F_pad)   bf16    (backbone Linear with GAP folded in)
    # bb_ref : (1, F_pad)        f32
    # wfc_ref: (F_pad, N_pad)    bf16    (fc weight, [in, out] layout)
    # bfc_ref: (1, N_pad)        f32
    # o_ref  : (TILE_B, N_pad)   f32

    # backbone projection (MXU, bf16 inputs, f32 accumulate)
    feats = jnp.dot(
        x_ref[...].astype(jnp.bfloat16), wb_ref[...],
        preferred_element_type=jnp.float32) + bb_ref[...]

    # classification head
    logits = jnp.dot(
        feats.astype(jnp.bfloat16), wfc_ref[...],
        preferred_element_type=jnp.float32) + bfc_ref[...]

    # mask padded class columns so they don't pollute the softmax normalizer
    col = jax.lax.broadcasted_iota(jnp.int32, logits.shape, 1)
    logits = jnp.where(col < num_cls, logits, jnp.float32(-1e30))

    # numerically-stable log-softmax over the class axis, in f32
    m = jnp.max(logits, axis=1, keepdims=True)
    shifted = logits - m
    lse = jnp.log(jnp.sum(jnp.exp(shifted), axis=1, keepdims=True))
    o_ref[...] = (shifted - lse).astype(o_ref.dtype)


# ---------------------------------------------------------------------------
# Wrapper: pad to lane-aligned shapes, fold GAP into the backbone weight,
#          launch one pallas_call over a batch grid, slice the result back.
# ---------------------------------------------------------------------------
def cls_end_forward(x_nchw, params):
    """x_nchw: [B, C, H, W] f32 -> [B, num_cls] log-probabilities (f32)."""
    B, C, H, W = x_nchw.shape
    FEAT = params["wb"].shape[1]            # 1000
    NUM_CLS = params["w_fc"].shape[1]       # e.g. 10

    K1 = C * H * W                          # flattened input dim
    K1_pad = _round_up(K1, 128)
    F_pad = _round_up(FEAT, 128)            # 1000 -> 1024
    N_pad = _round_up(NUM_CLS, 128)         # 10   -> 128
    TILE_B = 128 if B >= 128 else _round_up(B, 8)
    B_pad = _round_up(B, TILE_B)
    hw = H * W

    # Fold the GAP into the backbone Linear: mean(x, (2,3)) @ wb == x_flat @ wb_exp
    wb_exp = jnp.repeat(params["wb"], hw, axis=0) / jnp.float32(hw)   # [C*H*W, FEAT]

    # Zero-pad to lane/sublane aligned shapes (exact: zero rows/cols contribute 0).
    x_flat = x_nchw.reshape(B, K1)
    x_flat = jnp.pad(x_flat, ((0, B_pad - B), (0, K1_pad - K1)))
    wb_exp = jnp.pad(wb_exp, ((0, K1_pad - K1), (0, F_pad - FEAT))).astype(jnp.bfloat16)
    bb = jnp.pad(params["bb"], (0, F_pad - FEAT)).reshape(1, F_pad).astype(jnp.float32)
    w_fc = jnp.pad(params["w_fc"],
                   ((0, F_pad - FEAT), (0, N_pad - NUM_CLS))).astype(jnp.bfloat16)
    b_fc = jnp.pad(params["b_fc"], (0, N_pad - NUM_CLS)).reshape(1, N_pad).astype(jnp.float32)

    grid = (B_pad // TILE_B,)

    cost = pl.CostEstimate(
        flops=2 * B_pad * (K1_pad * F_pad + F_pad * N_pad),
        transcendentals=B_pad * N_pad,
        bytes_accessed=(x_flat.size * 4 + wb_exp.size * 2 + bb.size * 4
                        + w_fc.size * 2 + b_fc.size * 4 + B_pad * N_pad * 4),
    )

    out = pl.pallas_call(
        functools.partial(_cls_end_fused_kernel, num_cls=NUM_CLS),
        out_shape=jax.ShapeDtypeStruct((B_pad, N_pad), jnp.float32),
        grid=grid,
        in_specs=[
            pl.BlockSpec((TILE_B, K1_pad), lambda i: (i, 0)),   # x tile per grid step
            pl.BlockSpec((K1_pad, F_pad), lambda i: (0, 0)),    # backbone weight (resident)
            pl.BlockSpec((1, F_pad), lambda i: (0, 0)),         # backbone bias   (resident)
            pl.BlockSpec((F_pad, N_pad), lambda i: (0, 0)),     # fc weight       (resident)
            pl.BlockSpec((1, N_pad), lambda i: (0, 0)),         # fc bias         (resident)
        ],
        out_specs=pl.BlockSpec((TILE_B, N_pad), lambda i: (i, 0)),
        compiler_params=pltpu.CompilerParams(
            dimension_semantics=("parallel",)),
        cost_estimate=cost,
    )(x_flat, wb_exp, bb, w_fc, b_fc)

    return out[:B, :NUM_CLS]


# ---------------------------------------------------------------------------
# Pure-JAX reference of the same forward (f32) for sanity checking.
# ---------------------------------------------------------------------------
def _reference_forward(x_nchw, params):
    pooled = jnp.mean(x_nchw, axis=(2, 3))                 # [B, C]
    feats = pooled @ params["wb"] + params["bb"]           # [B, 1000]
    logits = feats @ params["w_fc"] + params["b_fc"]       # [B, num_cls]
    return jax.nn.log_softmax(logits, axis=1)


if __name__ == "__main__":
    B, C, H, W = 2, 4, 16, 16
    FEAT = 1000
    NUM_CLS = 10

    key = jax.random.PRNGKey(0)
    k_x, k_wb, k_bb, k_w, k_b = jax.random.split(key, 5)

    x = jax.random.normal(k_x, (B, C, H, W), dtype=jnp.float32)

    params = {
        # backbone stand-in: Linear C -> 1000 (applied after GAP)
        "wb": jax.random.normal(k_wb, (C, FEAT), dtype=jnp.float32) * 0.05,
        "bb": jax.random.normal(k_bb, (FEAT,), dtype=jnp.float32) * 0.01,
        # fc: Linear 1000 -> num_cls (stored as [in, out] = W.T of PyTorch weight)
        "w_fc": jax.random.normal(k_w, (FEAT, NUM_CLS), dtype=jnp.float32) * 0.02,
        "b_fc": jax.random.normal(k_b, (NUM_CLS,), dtype=jnp.float32) * 0.01,
    }

    out = cls_end_forward(x, params)
    jax.block_until_ready(out)

    # sanity 1: shape and log_softmax rows must sum (in prob space) to 1
    assert out.shape == (B, NUM_CLS)
    probs_sum = jnp.sum(jnp.exp(out), axis=1)
    assert bool(jnp.all(jnp.abs(probs_sum - 1.0) < 1e-4))

    # sanity 2: matches the f32 reference (loose tol: matmuls use bf16 inputs)
    ref = _reference_forward(x, params)
    assert bool(jnp.all(jnp.abs(out - ref) < 5e-2))

    print("KERNEL_OK")
</pallas_src>

<mosaic_0001>
module attributes {stable_mosaic.version = 11 : i64} {
  func.func @_cls_end_fused_kernel(%arg0: i32, %arg1: memref<8x1024xf32, #tpu.memory_space<vmem>>, %arg2: memref<1024x1024xbf16, #tpu.memory_space<vmem>>, %arg3: memref<1x1024xf32, #tpu.memory_space<vmem>>, %arg4: memref<1024x128xbf16, #tpu.memory_space<vmem>>, %arg5: memref<1x128xf32, #tpu.memory_space<vmem>>, %arg6: memref<8x128xf32, #tpu.memory_space<vmem>>) attributes {dimension_semantics = [#tpu.dimension_semantics<parallel>], iteration_bounds = array<i64: 1>, scalar_prefetch = 0 : i64, scratch_operands = 0 : i64, tpu.core_type = #tpu.core_type<tc>, window_params = [{transform_indices = @transform_0, window_bounds = array<i64: 8, 1024>}, {pipeline_mode = #tpu.pipeline_mode<synchronous>, transform_indices = @transform_1, window_bounds = array<i64: 1024, 1024>}, {pipeline_mode = #tpu.pipeline_mode<synchronous>, transform_indices = @transform_2, window_bounds = array<i64: 1, 1024>}, {pipeline_mode = #tpu.pipeline_mode<synchronous>, transform_indices = @transform_3, window_bounds = array<i64: 1024, 128>}, {pipeline_mode = #tpu.pipeline_mode<synchronous>, transform_indices = @transform_4, window_bounds = array<i64: 1, 128>}, {transform_indices = @transform_5, window_bounds = array<i64: 8, 128>}]} {
    %c0 = arith.constant 0 : index
    %c0_0 = arith.constant 0 : index
    %0 = vector.load %arg1[%c0, %c0_0] : memref<8x1024xf32, #tpu.memory_space<vmem>>, vector<8x1024xf32>
    %1 = arith.truncf %0 : vector<8x1024xf32> to vector<8x1024xbf16>
    %c0_1 = arith.constant 0 : index
    %c0_2 = arith.constant 0 : index
    %2 = vector.load %arg2[%c0_1, %c0_2] : memref<1024x1024xbf16, #tpu.memory_space<vmem>>, vector<1024x1024xbf16>
    %cst = arith.constant dense<0.000000e+00> : vector<8x1024xf32>
    %3 = tpu.matmul %1, %2, %cst {dimension_numbers = #tpu.dot_dimension_numbers<[1], [0], [0], [1], [0, 0, 1, 1], [], []>} : vector<8x1024xbf16>, vector<1024x1024xbf16>, vector<8x1024xf32> -> vector<8x1024xf32>
    %c0_3 = arith.constant 0 : index
    %c0_4 = arith.constant 0 : index
    %4 = vector.load %arg3[%c0_3, %c0_4] : memref<1x1024xf32, #tpu.memory_space<vmem>>, vector<1x1024xf32>
    %5 = vector.broadcast %4 : vector<1x1024xf32> to vector<8x1024xf32>
    %6 = arith.addf %3, %5 : vector<8x1024xf32>
    %7 = arith.truncf %6 : vector<8x1024xf32> to vector<8x1024xbf16>
    %c0_5 = arith.constant 0 : index
    %c0_6 = arith.constant 0 : index
    %8 = vector.load %arg4[%c0_5, %c0_6] : memref<1024x128xbf16, #tpu.memory_space<vmem>>, vector<1024x128xbf16>
    %cst_7 = arith.constant dense<0.000000e+00> : vector<8x128xf32>
    %9 = tpu.matmul %7, %8, %cst_7 {dimension_numbers = #tpu.dot_dimension_numbers<[1], [0], [0], [1], [0, 0, 1, 1], [], []>} : vector<8x1024xbf16>, vector<1024x128xbf16>, vector<8x128xf32> -> vector<8x128xf32>
    %c0_8 = arith.constant 0 : index
    %c0_9 = arith.constant 0 : index
    %10 = vector.load %arg5[%c0_8, %c0_9] : memref<1x128xf32, #tpu.memory_space<vmem>>, vector<1x128xf32>
    %11 = vector.broadcast %10 : vector<1x128xf32> to vector<8x128xf32>
    %12 = arith.addf %9, %11 : vector<8x128xf32>
    %13 = tpu.iota {dimensions = array<i32: 1>} : vector<8x128xi32>
    %c10_i32 = arith.constant 10 : i32
    %14 = vector.broadcast %c10_i32 : i32 to vector<8x128xi32>
    %15 = arith.cmpi slt, %13, %14 : vector<8x128xi32>
    %cst_10 = arith.constant -1.000000e+30 : f32
    %16 = vector.broadcast %cst_10 : f32 to vector<8x128xf32>
    %17 = arith.select %15, %12, %16 : vector<8x128xi1>, vector<8x128xf32>
    %cst_11 = arith.constant dense<0xFF800000> : vector<8xf32>
    %18 = vector.multi_reduction <maximumf>, %17, %cst_11 [1] : vector<8x128xf32> to vector<8xf32>
    %19 = vector.shape_cast %18 : vector<8xf32> to vector<8x1xf32>
    %20 = vector.broadcast %19 : vector<8x1xf32> to vector<8x128xf32>
    %21 = arith.subf %17, %20 : vector<8x128xf32>
    %22 = math.exp %21 : vector<8x128xf32>
    %cst_12 = arith.constant dense<0.000000e+00> : vector<8xf32>
    %23 = vector.multi_reduction <add>, %22, %cst_12 [1] : vector<8x128xf32> to vector<8xf32>
    %24 = vector.shape_cast %23 : vector<8xf32> to vector<8x1xf32>
    %25 = math.log %24 : vector<8x1xf32>
    %26 = vector.broadcast %25 : vector<8x1xf32> to vector<8x128xf32>
    %27 = arith.subf %21, %26 : vector<8x128xf32>
    %c0_13 = arith.constant 0 : index
    %c0_14 = arith.constant 0 : index
    %28 = vector.load %arg6[%c0_13, %c0_14] : memref<8x128xf32, #tpu.memory_space<vmem>>, vector<8x128xf32>
    tpu.vector_store %arg6[%c0_13, %c0_14], %27 {strides = array<i32>} : memref<8x128xf32, #tpu.memory_space<vmem>>, vector<8x128xf32>,
    return
  }
  func.func @transform_0(%arg0: i32) -> (i32, i32) {
    %c0_i32 = arith.constant 0 : i32
    %c0_i32_0 = arith.constant 0 : i32
    return %arg0, %c0_i32 : i32, i32
  }
  func.func @transform_1(%arg0: i32) -> (i32, i32) {
    %c0_i32 = arith.constant 0 : i32
    %c0_i32_0 = arith.constant 0 : i32
    %c0_i32_1 = arith.constant 0 : i32
    return %c0_i32, %c0_i32_0 : i32, i32
  }
  func.func @transform_2(%arg0: i32) -> (i32, i32) {
    %c0_i32 = arith.constant 0 : i32
    %c0_i32_0 = arith.constant 0 : i32
    %c0_i32_1 = arith.constant 0 : i32
    return %c0_i32, %c0_i32_0 : i32, i32
  }
  func.func @transform_3(%arg0: i32) -> (i32, i32) {
    %c0_i32 = arith.constant 0 : i32
    %c0_i32_0 = arith.constant 0 : i32
    %c0_i32_1 = arith.constant 0 : i32
    return %c0_i32, %c0_i32_0 : i32, i32
  }
  func.func @transform_4(%arg0: i32) -> (i32, i32) {
    %c0_i32 = arith.constant 0 : i32
    %c0_i32_0 = arith.constant 0 : i32
    %c0_i32_1 = arith.constant 0 : i32
    return %c0_i32, %c0_i32_0 : i32, i32
  }
  func.func @transform_5(%arg0: i32) -> (i32, i32) {
    %c0_i32 = arith.constant 0 : i32
    %c0_i32_0 = arith.constant 0 : i32
    return %arg0, %c0_i32 : i32, i32
  }
}

</mosaic_0001>

<bundles_post_ra>
// kernel: tpu_custom_call.1
= control target key start
LH: loop header
LB: loop body
LE: loop exit
PB: predicated region body
PF: predicated region fallthrough
CT: control target
= control target key end

     0   :  { %10 = vsyncpa [#allocation3], 0  ;;  %s5722_s0 = inlined_call_operand.hbm [shape: f32[8,1024], index: 0, kind: input, shape index: {}]   ;;  %s5723_s1 = inlined_call_operand.hbm [shape: bf16[1024,1024], index: 1, kind: input, shape index: {}]   ;;  %s5724_s2 = inlined_call_operand.hbm [shape: f32[1,1024], index: 2, kind: input, shape index: {}]   ;;  %s5725_s3 = inlined_call_operand.hbm [shape: bf16[1024,128], index: 3, kind: input, shape index: {}]   ;;  %s5726_s4 = inlined_call_operand.hbm [shape: f32[1,128], index: 4, kind: input, shape index: {}]   ;;  %s5727_s5 = inlined_call_operand.hbm [shape: f32[8,128], index: 5, kind: output, shape index: {}]  }
   0x1   :  { %11 = vsyncpa [#allocation6], 0 }
   0x2   :  { %12 = vsyncpa [#allocation9], 0 }
   0x3   :  { %13 = vsyncpa [#allocation4], 0  ;;  %s5528_s18 = smov [#allocation5]   ;;  %s5388_s22 = scalar_lea.hbm %s5723_s1, 65536 }
   0x4   :  { %s29_s19 = sshll.u32 %s5528_s18, 4  ;;  %p5389_p0 = scmp.ne.s32.totalorder %s5723_s1, %s5388_s22  ;;  %s30_s19 = int_to_ptr.vmem [resolvable:$true] %s29_s19 }
   0x5   :  { %p5392_p1 = scmp.lt.u32.totalorder %s5388_s22, %s5723_s1 }
   0x7   :  { %p5394_p2 = pnand %p5392_p1, %p5389_p0 }
   0x9   :  { %5397 = shalt.err (!%p5394_p2)
}
   0xa   :  { %s5398_s27 = scalar_lea.vmem %s30_s19, 65536  ;;  %p5403_p4 = scmp.lt.s32.totalorder %s30_s19, %s30_s19 }
   0xb   :  { %p5399_p3 = scmp.ne.s32.totalorder %s30_s19, %s5398_s27  ;;  %p5404_p5 = scmp.lt.s32.totalorder %s5398_s27, %s5398_s27 }
   0xd   :  { %p5405_p6 = por %p5404_p5, %p5403_p4 }
   0xf   :  { %p5406_p7 = pnand %p5405_p6, %p5399_p3 }
  0x11   :  { %5409 = shalt.err (!%p5406_p7)
}
  0x12   :  { %s5529_s28 = smov 512   ;;  %s5530_s29 = smov 32  }
  0x13   :  { %35 = dma.hbm_to_vmem [thread:$0]  %s5723_s1, 65536, %s30_s19, [#allocation6], %s5529_s28, %s5529_s28, %s5530_s29  }
  0x14   :  { %s5531_s7 = smov [#allocation8]   ;;  %s5410_s11 = scalar_lea.hbm %s5725_s3, 8192 }
  0x15   :  { %s51_s8 = sshll.u32 %s5531_s7, 4  ;;  %p5411_p8 = scmp.ne.s32.totalorder %s5725_s3, %s5410_s11  ;;  %s52_s8 = int_to_ptr.vmem [resolvable:$true] %s51_s8 }
  0x16   :  { %p5414_p9 = scmp.lt.u32.totalorder %s5410_s11, %s5725_s3 }
  0x18   :  { %p5416_p10 = pnand %p5414_p9, %p5411_p8 }
  0x1a   :  { %5419 = shalt.err (!%p5416_p10)
}
  0x1b   :  { %s5420_s16 = scalar_lea.vmem %s52_s8, 8192  ;;  %p5425_p12 = scmp.lt.s32.totalorder %s52_s8, %s52_s8 }
  0x1c   :  { %p5421_p11 = scmp.ne.s32.totalorder %s52_s8, %s5420_s16  ;;  %p5426_p13 = scmp.lt.s32.totalorder %s5420_s16, %s5420_s16 }
  0x1e   :  { %p5427_p0 = por %p5426_p13, %p5425_p12 }
  0x20   :  { %p5428_p1 = pnand %p5427_p0, %p5421_p11 }
  0x22   :  { %5431 = shalt.err (!%p5428_p1)
}
  0x23   :  { %s5532_s1 = smov 64   ;;  %s5533_s17 = smov 4  }
  0x24   :  { %57 = dma.hbm_to_vmem [thread:$0]  %s5725_s3, 8192, %s52_s8, [#allocation9], %s5532_s1, %s5532_s1, %s5533_s17  }
  0x25   :  { %s5534_s20 = smov [#allocation2]   ;;  %s5535_s22 = smov [#allocation7]  }
  0x26   :  { %s20_s21 = sshll.u32 %s5534_s20, 4  ;;  %s42_s23 = sshll.u32 %s5535_s22, 4  ;;  %s21_s21 = int_to_ptr.vmem [resolvable:$true] %s20_s21  ;;  %s43_s23 = int_to_ptr.vmem [resolvable:$true] %s42_s23 }
  0x27   :  { %s5432_s26 = scalar_lea.hbm %s5722_s0, 1024 }
  0x28   :  { %p5433_p2 = scmp.ne.s32.totalorder %s5722_s0, %s5432_s26  ;;  %p5436_p3 = scmp.lt.u32.totalorder %s5432_s26, %s5722_s0 }
  0x2a   :  { %p5438_p4 = pnand %p5436_p3, %p5433_p2 }
  0x2c   :  { %5441 = shalt.err (!%p5438_p4)
}
  0x2d   :  { %s5442_s3 = scalar_lea.vmem %s21_s21, 1024  ;;  %p5447_p6 = scmp.lt.s32.totalorder %s21_s21, %s21_s21 }
  0x2e   :  { %p5443_p5 = scmp.ne.s32.totalorder %s21_s21, %s5442_s3  ;;  %p5448_p7 = scmp.lt.s32.totalorder %s5442_s3, %s5442_s3 }
  0x30   :  { %p5449_p8 = por %p5448_p7, %p5447_p6 }
  0x32   :  { %p5450_p9 = pnand %p5449_p8, %p5443_p5 }
  0x34   :  { %5453 = shalt.err (!%p5450_p9)
}
  0x35   :  { %23 = dma.hbm_to_vmem [thread:$0]  %s5722_s0, 1024, %s21_s21, [#allocation3]  }
  0x36   :  { %s5454_s10 = scalar_lea.hbm %s5724_s2, 128 }
  0x37   :  { %p5455_p10 = scmp.ne.s32.totalorder %s5724_s2, %s5454_s10  ;;  %p5458_p11 = scmp.lt.u32.totalorder %s5454_s10, %s5724_s2 }
  0x39   :  { %p5460_p12 = pnand %p5458_p11, %p5455_p10 }
  0x3b   :  { %5463 = shalt.err (!%p5460_p12)
}
  0x3c   :  { %s5464_s15 = scalar_lea.vmem %s43_s23, 128  ;;  %p5469_p0 = scmp.lt.s32.totalorder %s43_s23, %s43_s23 }
  0x3d   :  { %p5465_p13 = scmp.ne.s32.totalorder %s43_s23, %s5464_s15  ;;  %p5470_p1 = scmp.lt.s32.totalorder %s5464_s15, %s5464_s15 }
  0x3f   :  { %p5471_p2 = por %p5470_p1, %p5469_p0 }
  0x41   :  { %p5472_p3 = pnand %p5471_p2, %p5465_p13 }
  0x43   :  { %5475 = shalt.err (!%p5472_p3)
}
  0x44   :  { %45 = dma.hbm_to_vmem [thread:$0]  %s5724_s2, 128, %s43_s23, [#allocation6]  }
  0x45   :  { %s5536_s1 = smov [#allocation10]   ;;  %s5476_s20 = scalar_lea.hbm %s5726_s4, 16 }
  0x46   :  { %s64_s17 = sshll.u32 %s5536_s1, 4  ;;  %p5477_p4 = scmp.ne.s32.totalorder %s5726_s4, %s5476_s20  ;;  %s65_s17 = int_to_ptr.vmem [resolvable:$true] %s64_s17 }
  0x47   :  { %p5480_p5 = scmp.lt.u32.totalorder %s5476_s20, %s5726_s4 }
  0x49   :  { %p5482_p6 = pnand %p5480_p5, %p5477_p4 }
  0x4b   :  { %5485 = shalt.err (!%p5482_p6)
}
  0x4c   :  { %s5486_s26 = scalar_lea.vmem %s65_s17, 16  ;;  %s5490_s2 = scalar_lea.vmem %s65_s17, 32 }
  0x4d   :  { %p5487_p7 = scmp.ne.s32.totalorder %s65_s17, %s5486_s26  ;;  %p5491_p8 = scmp.lt.s32.totalorder %s65_s17, %s65_s17 }
  0x4e   :  { %p5492_p9 = scmp.lt.s32.totalorder %s5490_s2, %s5486_s26 }
  0x50   :  { %p5493_p10 = por %p5492_p9, %p5491_p8 }
  0x52   :  { %p5494_p11 = pnand %p5493_p10, %p5487_p7 }
  0x54   :  { %5497 = shalt.err (!%p5494_p11)
}
  0x55   :  { %67 = dma.hbm_to_vmem [thread:$0]  %s5726_s4, 16, %s65_s17, [#allocation9]  }
  0x56   :  { %5520 = dma.done.wait [#allocation3], 1024  }
  0x57   :  { %5521 = vsyncadd [#allocation3], 4294966272 }
  0x58   :  { %5522 = dma.done.wait [#allocation6], 65664  }
  0x59   :  { %5523 = vsyncadd [#allocation6], 4294901632 }
  0x5a   :  { %5524 = dma.done.wait [#allocation9], 8208  }
  0x5b   :  { %5525 = vsyncadd [#allocation9], 4294959088  ;;  %v100_v0 = vld [vmem:[#allocation5] sm:$0xff]  ;;  %v101_v2 = vld [vmem:[#allocation5 + $0x8] sm:$0xff]  ;;  %s5537_s4 = smov [#allocation11]  }
  0x5c   :  { %v104_v1 = vld [vmem:[#allocation5 + $0x20] sm:$0xff]  ;;  %v105_v4 = vld [vmem:[#allocation5 + $0x28] sm:$0xff]  ;;  %s4578_s28 = sshll.u32 %s5537_s4, 4  ;;  %s4579_s28 = int_to_ptr.vmem [resolvable:$true] %s4578_s28 }
  0x5d   :  { %v4590_v3 = vcombine.high %v100_v0, %v104_v1  ;;  %v4589_v5 = vcombine.low %v100_v0, %v104_v1  ;;  %v108_v6 = vld [vmem:[#allocation5 + $0x40] sm:$0xff]  ;;  %v4592_v8 = vcombine.high %v101_v2, %v105_v4  ;;  %v4591_v9 = vcombine.low %v101_v2, %v105_v4  ;;  %v109_v11 = vld [vmem:[#allocation5 + $0x48] sm:$0xff]  ;;  %s5498_s29 = scalar_lea.vmem %s4579_s28, 128  ;;  %p5503_p13 = scmp.lt.s32.totalorder %s4579_s28, %s4579_s28 }
  0x5e   :  { %v112_v7 = vld [vmem:[#allocation5 + $0x60] sm:$0xff]  ;;  %v113_v12 = vld [vmem:[#allocation5 + $0x68] sm:$0xff]  ;;  %p5499_p12 = scmp.ne.s32.totalorder %s4579_s28, %s5498_s29  ;;  %p5504_p0 = scmp.lt.s32.totalorder %s5498_s29, %s5498_s29 }
  0x5f   :  { %v4598_v10 = vcombine.high %v108_v6, %v112_v7  ;;  %v116_v13 = vld [vmem:[#allocation5 + $0x80] sm:$0xff]  ;;  %3214 = vmatprep.subr.bf16.mxu0 %v4590_v3  ;;  %v4600_v14 = vcombine.high %v109_v11, %v113_v12  ;;  %v117_v16 = vld [vmem:[#allocation5 + $0x88] sm:$0xff]  ;;  %3378 = vmatprep.subr.bf16.mxu1 %v4592_v8  ;;  %v4597_v18 = vcombine.low %v108_v6, %v112_v7 }
  0x60   :  { %v120_v15 = vld [vmem:[#allocation5 + $0xa0] sm:$0xff]  ;;  %v121_v17 = vld [vmem:[#allocation5 + $0xa8] sm:$0xff]  ;;  %3215 = vmatpush1.bf16.msra.mxu0 %v4589_v5  ;;  %3379 = vmatpush1.bf16.msra.mxu1 %v4591_v9  ;;  %v4599_v19 = vcombine.low %v109_v11, %v113_v12  ;;  %p5505_p1 = por %p5504_p0, %p5503_p13 }
  0x61   :  { %3216 = vmatprep.subr.bf16.mxu0 %v4598_v10  ;;  %v4606_v20 = vcombine.high %v116_v13, %v120_v15  ;;  %3380 = vmatprep.subr.bf16.mxu1 %v4600_v14  ;;  %v4608_v21 = vcombine.high %v117_v16, %v121_v17  ;;  %v124_v22 = vld [vmem:[#allocation5 + $0xc0] sm:$0xff]  ;;  %v125_v24 = vld [vmem:[#allocation5 + $0xc8] sm:$0xff]  ;;  %v4605_v26 = vcombine.low %v116_v13, %v120_v15 }
  0x62   :  { %v128_v23 = vld [vmem:[#allocation5 + $0xe0] sm:$0xff]  ;;  %v129_v25 = vld [vmem:[#allocation5 + $0xe8] sm:$0xff]  ;;  %v4607_v27 = vcombine.low %v117_v16, %v121_v17  ;;  %p5506_p2 = pnand %p5505_p1, %p5499_p12 }
  0x63   :  { %v4614_v28 = vcombine.high %v124_v22, %v128_v23  ;;  %v4616_v29 = vcombine.high %v125_v24, %v129_v25  ;;  %v132_v30 = vld [vmem:[#allocation5 + $0x100] sm:$0xff]  ;;  %v133_v32 = vld [vmem:[#allocation5 + $0x108] sm:$0xff]  ;;  %v4613_v34 = vcombine.low %v124_v22, %v128_v23  ;;  %v4615_v35 = vcombine.low %v125_v24, %v129_v25 }
  0x64   :  { %3217 = vmatpush1.bf16.msra.mxu0 %v4597_v18  ;;  %3381 = vmatpush1.bf16.msra.mxu1 %v4599_v19  ;;  %v136_v31 = vld [vmem:[#allocation5 + $0x120] sm:$0xff]  ;;  %v137_v33 = vld [vmem:[#allocation5 + $0x128] sm:$0xff] }
  0x65   :  { %3218 = vmatprep.subr.bf16.mxu0 %v4606_v20  ;;  %3382 = vmatprep.subr.bf16.mxu1 %v4608_v21  ;;  %v4622_v36 = vcombine.high %v132_v30, %v136_v31  ;;  %v4624_v37 = vcombine.high %v133_v32, %v137_v33  ;;  %v140_v38 = vld [vmem:[#allocation5 + $0x140] sm:$0xff]  ;;  %v141_v40 = vld [vmem:[#allocation5 + $0x148] sm:$0xff]  ;;  %v4621_v42 = vcombine.low %v132_v30, %v136_v31 }
  0x66   :  { %v144_v39 = vld [vmem:[#allocation5 + $0x160] sm:$0xff]  ;;  %v145_v41 = vld [vmem:[#allocation5 + $0x168] sm:$0xff]  ;;  %v4623_v43 = vcombine.low %v133_v32, %v137_v33 }
  0x67   :  { %v4630_v44 = vcombine.high %v140_v38, %v144_v39  ;;  %v4632_v45 = vcombine.high %v141_v40, %v145_v41  ;;  %v148_v46 = vld [vmem:[#allocation5 + $0x180] sm:$0xff]  ;;  %v149_v48 = vld [vmem:[#allocation5 + $0x188] sm:$0xff]  ;;  %v4629_v50 = vcombine.low %v140_v38, %v144_v39  ;;  %v4631_v51 = vcombine.low %v141_v40, %v145_v41 }
  0x68   :  { %3219 = vmatpush1.bf16.msra.mxu0 %v4605_v26  ;;  %3383 = vmatpush1.bf16.msra.mxu1 %v4607_v27  ;;  %v152_v47 = vld [vmem:[#allocation5 + $0x1a0] sm:$0xff]  ;;  %v153_v49 = vld [vmem:[#allocation5 + $0x1a8] sm:$0xff] }
  0x69   :  { %3220 = vmatprep.subr.bf16.mxu0 %v4614_v28  ;;  %3384 = vmatprep.subr.bf16.mxu1 %v4616_v29  ;;  %v4638_v52 = vcombine.high %v148_v46, %v152_v47  ;;  %v85_v53 = vld [vmem:[#allocation2 + $0x8] sm:$0xff]  ;;  %v4640_v54 = vcombine.high %v149_v48, %v153_v49  ;;  %v156_v55 = vld [vmem:[#allocation5 + $0x1c0] sm:$0xff]  ;;  %v4637_v60 = vcombine.low %v148_v46, %v152_v47 }
  0x6a   :  { %v160_v56 = vld [vmem:[#allocation5 + $0x1e0] sm:$0xff]  ;;  %v5628_v57 = vpack.c.bf16 %v85_v53, %v85_v53  ;;  %v157_v58 = vld [vmem:[#allocation5 + $0x1c8] sm:$0xff]  ;;  %v4639_v61 = vcombine.low %v149_v48, %v153_v49 }
  0x6b   :  { %v161_v59 = vld [vmem:[#allocation5 + $0x1e8] sm:$0xff]  ;;  %v4646_v62 = vcombine.high %v156_v55, %v160_v56  ;;  %v164_v0 = vld [vmem:[#allocation5 + $0x200] sm:$0xff]  ;;  %v4645_v4 = vcombine.low %v156_v55, %v160_v56 }
  0x6c   :  { %3221 = vmatpush1.bf16.msra.mxu0 %v4613_v34  ;;  %3385 = vmatpush1.bf16.msra.mxu1 %v4615_v35  ;;  %v4648_v63 = vcombine.high %v157_v58, %v161_v59  ;;  %v168_v1 = vld [vmem:[#allocation5 + $0x220] sm:$0xff]  ;;  %v165_v2 = vld [vmem:[#allocation5 + $0x208] sm:$0xff]  ;;  %v4647_v5 = vcombine.low %v157_v58, %v161_v59 }
  0x6d   :  { %3222 = vmatprep.subr.bf16.mxu0 %v4622_v36  ;;  %3386 = vmatprep.subr.bf16.mxu1 %v4624_v37  ;;  %v169_v3 = vld [vmem:[#allocation5 + $0x228] sm:$0xff]  ;;  %v4654_v6 = vcombine.high %v164_v0, %v168_v1  ;;  %v172_v8 = vld [vmem:[#allocation5 + $0x240] sm:$0xff]  ;;  %v4653_v12 = vcombine.low %v164_v0, %v168_v1 }
  0x6e   :  { %3246 = vmatprep.mubr.bf16.mxu0 %v5628_v57  ;;  %3410 = vmatprep.mubr.bf16.mxu1 %v5628_v57  ;;  %v4656_v7 = vcombine.high %v165_v2, %v169_v3  ;;  %v176_v9 = vld [vmem:[#allocation5 + $0x260] sm:$0xff]  ;;  %v173_v10 = vld [vmem:[#allocation5 + $0x248] sm:$0xff]  ;;  %v4655_v13 = vcombine.low %v165_v2, %v169_v3 }
  0x6f   :  { %v177_v11 = vld [vmem:[#allocation5 + $0x268] sm:$0xff]  ;;  %v4662_v14 = vcombine.high %v172_v8, %v176_v9  ;;  %v180_v16 = vld [vmem:[#allocation5 + $0x280] sm:$0xff]  ;;  %v4661_v20 = vcombine.low %v172_v8, %v176_v9 }
  0x70   :  { %3223 = vmatpush1.bf16.msra.mxu0 %v4621_v42  ;;  %3387 = vmatpush1.bf16.msra.mxu1 %v4623_v43  ;;  %v4664_v15 = vcombine.high %v173_v10, %v177_v11  ;;  %v184_v17 = vld [vmem:[#allocation5 + $0x2a0] sm:$0xff]  ;;  %v181_v18 = vld [vmem:[#allocation5 + $0x288] sm:$0xff]  ;;  %v4663_v21 = vcombine.low %v173_v10, %v177_v11 }
  0x71   :  { %3224 = vmatprep.subr.bf16.mxu0 %v4630_v44  ;;  %3388 = vmatprep.subr.bf16.mxu1 %v4632_v45  ;;  %v185_v19 = vld [vmem:[#allocation5 + $0x2a8] sm:$0xff]  ;;  %v4670_v22 = vcombine.high %v180_v16, %v184_v17  ;;  %v188_v24 = vld [vmem:[#allocation5 + $0x2c0] sm:$0xff]  ;;  %v4669_v28 = vcombine.low %v180_v16, %v184_v17 }
  0x72   :  { %v4672_v23 = vcombine.high %v181_v18, %v185_v19  ;;  %v192_v25 = vld [vmem:[#allocation5 + $0x2e0] sm:$0xff]  ;;  %v189_v26 = vld [vmem:[#allocation5 + $0x2c8] sm:$0xff]  ;;  %v4671_v29 = vcombine.low %v181_v18, %v185_v19 }
  0x73   :  { %v193_v27 = vld [vmem:[#allocation5 + $0x2e8] sm:$0xff]  ;;  %v4678_v30 = vcombine.high %v188_v24, %v192_v25  ;;  %v196_v32 = vld [vmem:[#allocation5 + $0x300] sm:$0xff]  ;;  %v4677_v36 = vcombine.low %v188_v24, %v192_v25 }
  0x74   :  { %3225 = vmatpush1.bf16.msra.mxu0 %v4629_v50  ;;  %3389 = vmatpush1.bf16.msra.mxu1 %v4631_v51  ;;  %v4680_v31 = vcombine.high %v189_v26, %v193_v27  ;;  %v200_v33 = vld [vmem:[#allocation5 + $0x320] sm:$0xff]  ;;  %v197_v34 = vld [vmem:[#allocation5 + $0x308] sm:$0xff]  ;;  %v4679_v37 = vcombine.low %v189_v26, %v193_v27 }
  0x75   :  { %3226 = vmatprep.subr.bf16.mxu0 %v4638_v52  ;;  %3390 = vmatprep.subr.bf16.mxu1 %v4640_v54  ;;  %v201_v35 = vld [vmem:[#allocation5 + $0x328] sm:$0xff]  ;;  %v4686_v38 = vcombine.high %v196_v32, %v200_v33  ;;  %v204_v40 = vld [vmem:[#allocation5 + $0x340] sm:$0xff]  ;;  %v4685_v44 = vcombine.low %v196_v32, %v200_v33 }
  0x76   :  { %v4688_v39 = vcombine.high %v197_v34, %v201_v35  ;;  %v208_v41 = vld [vmem:[#allocation5 + $0x360] sm:$0xff]  ;;  %v205_v42 = vld [vmem:[#allocation5 + $0x348] sm:$0xff]  ;;  %v4687_v45 = vcombine.low %v197_v34, %v201_v35 }
  0x77   :  { %v209_v43 = vld [vmem:[#allocation5 + $0x368] sm:$0xff]  ;;  %v4694_v46 = vcombine.high %v204_v40, %v208_v41  ;;  %v212_v48 = vld [vmem:[#allocation5 + $0x380] sm:$0xff]  ;;  %v4693_v52 = vcombine.low %v204_v40, %v208_v41 }
  0x78   :  { %3227 = vmatpush1.bf16.msra.mxu0 %v4637_v60  ;;  %3391 = vmatpush1.bf16.msra.mxu1 %v4639_v61  ;;  %v4696_v47 = vcombine.high %v205_v42, %v209_v43  ;;  %v216_v49 = vld [vmem:[#allocation5 + $0x3a0] sm:$0xff]  ;;  %v213_v50 = vld [vmem:[#allocation5 + $0x388] sm:$0xff]  ;;  %v4695_v53 = vcombine.low %v205_v42, %v209_v43 }
  0x79   :  { %3228 = vmatprep.subr.bf16.mxu0 %v4646_v62  ;;  %3392 = vmatprep.subr.bf16.mxu1 %v4648_v63  ;;  %v217_v51 = vld [vmem:[#allocation5 + $0x3a8] sm:$0xff]  ;;  %v4702_v54 = vcombine.high %v212_v48, %v216_v49  ;;  %v220_v56 = vld [vmem:[#allocation5 + $0x3c0] sm:$0xff]  ;;  %v4701_v61 = vcombine.low %v212_v48, %v216_v49 }
  0x7a   :  { %v4704_v55 = vcombine.high %v213_v50, %v217_v51  ;;  %v224_v58 = vld [vmem:[#allocation5 + $0x3e0] sm:$0xff]  ;;  %v221_v59 = vld [vmem:[#allocation5 + $0x3c8] sm:$0xff]  ;;  %v4703_v62 = vcombine.low %v213_v50, %v217_v51 }
  0x7b   :  { %v225_v60 = vld [vmem:[#allocation5 + $0x3e8] sm:$0xff]  ;;  %v4710_v63 = vcombine.high %v220_v56, %v224_v58  ;;  %v228_v1 = vld [vmem:[#allocation5 + $0x400] sm:$0xff] }
  0x7c   :  { %3229 = vmatpush1.bf16.msra.mxu0 %v4645_v4  ;;  %3393 = vmatpush1.bf16.msra.mxu1 %v4647_v5  ;;  %v4712_v0 = vcombine.high %v221_v59, %v225_v60  ;;  %v232_v2 = vld [vmem:[#allocation5 + $0x420] sm:$0xff]  ;;  %v229_v3 = vld [vmem:[#allocation5 + $0x408] sm:$0xff]  ;;  %v4709_v5 = vcombine.low %v220_v56, %v224_v58 }
  0x7d   :  { %3230 = vmatprep.subr.bf16.mxu0 %v4654_v6  ;;  %3394 = vmatprep.subr.bf16.mxu1 %v4656_v7  ;;  %v233_v4 = vld [vmem:[#allocation5 + $0x428] sm:$0xff]  ;;  %v84_v6 = vld [vmem:[#allocation2] sm:$0xff]  ;;  %v4711_v7 = vcombine.low %v221_v59, %v225_v60  ;;  %v4718_v8 = vcombine.high %v228_v1, %v232_v2  ;;  %v4717_v16 = vcombine.low %v228_v1, %v232_v2 }
  0x7e   :  { %v4720_v9 = vcombine.high %v229_v3, %v233_v4  ;;  %v236_v10 = vld [vmem:[#allocation5 + $0x440] sm:$0xff]  ;;  %v4719_v17 = vcombine.low %v229_v3, %v233_v4  ;;  %v249_v24 = vld [vmem:[#allocation5 + $0x4a8] sm:$0xff] }
  0x7f   :  { %v240_v11 = vld [vmem:[#allocation5 + $0x460] sm:$0xff]  ;;  %v257_v32 = vld [vmem:[#allocation5 + $0x4e8] sm:$0xff] }
  0x80   :  { %3231 = vmatpush1.bf16.msra.mxu0 %v4653_v12  ;;  %3395 = vmatpush1.bf16.msra.mxu1 %v4655_v13  ;;  %v5632_v12 = vpack.c.bf16 %v84_v6, %v84_v6  ;;  %v237_v13 = vld [vmem:[#allocation5 + $0x448] sm:$0xff]  ;;  %v4726_v18 = vcombine.high %v236_v10, %v240_v11  ;;  %v4725_v25 = vcombine.low %v236_v10, %v240_v11  ;;  %v296_v6 = vld [vmem:[#allocation5 + $0x620] sm:$0xff] }
  0x81   :  { %3232 = vmatprep.subr.bf16.mxu0 %v4662_v14  ;;  %3396 = vmatprep.subr.bf16.mxu1 %v4664_v15  ;;  %v241_v14 = vld [vmem:[#allocation5 + $0x468] sm:$0xff]  ;;  %v87_v15 = vld [vmem:[#allocation2 + $0x18] sm:$0xff] }
  0x82   :  { %v4728_v19 = vcombine.high %v237_v13, %v241_v14  ;;  %v4727_v26 = vcombine.low %v237_v13, %v241_v14  ;;  %v265_v40 = vld [vmem:[#allocation5 + $0x528] sm:$0xff]  ;;  %v300_v14 = vld [vmem:[#allocation5 + $0x640] sm:$0xff] }
  0x83   :  { %v273_v48 = vld [vmem:[#allocation5 + $0x568] sm:$0xff] }
  0x84   :  { %3233 = vmatpush1.bf16.msra.mxu0 %v4661_v20  ;;  %3397 = vmatpush1.bf16.msra.mxu1 %v4663_v21  ;;  %v244_v20 = vld [vmem:[#allocation5 + $0x480] sm:$0xff]  ;;  %v281_v56 = vld [vmem:[#allocation5 + $0x5a8] sm:$0xff] }
  0x85   :  { %3234 = vmatprep.subr.bf16.mxu0 %v4670_v22  ;;  %3398 = vmatprep.subr.bf16.mxu1 %v4672_v23  ;;  %v248_v21 = vld [vmem:[#allocation5 + $0x4a0] sm:$0xff]  ;;  %v245_v22 = vld [vmem:[#allocation5 + $0x488] sm:$0xff]  ;;  %v5634_v23 = vpack.c.bf16 %v87_v15, %v87_v15 }
  0x86   :  { %v4734_v27 = vcombine.high %v244_v20, %v248_v21  ;;  %v4733_v33 = vcombine.low %v244_v20, %v248_v21  ;;  %v4735_v34 = vcombine.low %v245_v22, %v249_v24  ;;  %v289_v1 = vld [vmem:[#allocation5 + $0x5e8] sm:$0xff]  ;;  %v304_v15 = vld [vmem:[#allocation5 + $0x660] sm:$0xff] }
  0x87   :  { %v4790_v21 = vcombine.high %v300_v14, %v304_v15 }
  0x88   :  { %3235 = vmatpush1.bf16.msra.mxu0 %v4669_v28  ;;  %3399 = vmatpush1.bf16.msra.mxu1 %v4671_v29  ;;  %v252_v28 = vld [vmem:[#allocation5 + $0x4c0] sm:$0xff] }
  0x89   :  { %3236 = vmatprep.subr.bf16.mxu0 %v4678_v30  ;;  %3400 = vmatprep.subr.bf16.mxu1 %v4680_v31  ;;  %v256_v29 = vld [vmem:[#allocation5 + $0x4e0] sm:$0xff]  ;;  %v253_v30 = vld [vmem:[#allocation5 + $0x4c8] sm:$0xff]  ;;  %v4736_v31 = vcombine.high %v245_v22, %v249_v24 }
  0x8a   :  { %v4742_v35 = vcombine.high %v252_v28, %v256_v29  ;;  %v4741_v41 = vcombine.low %v252_v28, %v256_v29  ;;  %v4743_v42 = vcombine.low %v253_v30, %v257_v32  ;;  %v308_v22 = vld [vmem:[#allocation5 + $0x680] sm:$0xff]  ;;  %v4789_v28 = vcombine.low %v300_v14, %v304_v15  ;;  %v86_v14 = vld [vmem:[#allocation2 + $0x10] sm:$0xff] }
  0x8b   :  { %v312_v24 = vld [vmem:[#allocation5 + $0x6a0] sm:$0xff] }
  0x8c   :  { %3237 = vmatpush1.bf16.msra.mxu0 %v4677_v36  ;;  %3401 = vmatpush1.bf16.msra.mxu1 %v4679_v37  ;;  %v260_v36 = vld [vmem:[#allocation5 + $0x500] sm:$0xff] }
  0x8d   :  { %3238 = vmatprep.subr.bf16.mxu0 %v4686_v38  ;;  %3402 = vmatprep.subr.bf16.mxu1 %v4688_v39  ;;  %v264_v37 = vld [vmem:[#allocation5 + $0x520] sm:$0xff]  ;;  %v261_v38 = vld [vmem:[#allocation5 + $0x508] sm:$0xff]  ;;  %v4744_v39 = vcombine.high %v253_v30, %v257_v32  ;;  %v4798_v30 = vcombine.high %v308_v22, %v312_v24 }
  0x8e   :  { %v4750_v43 = vcombine.high %v260_v36, %v264_v37  ;;  %v4749_v49 = vcombine.low %v260_v36, %v264_v37  ;;  %v4751_v50 = vcombine.low %v261_v38, %v265_v40  ;;  %v320_v32 = vld [vmem:[#allocation5 + $0x6e0] sm:$0xff]  ;;  %v4797_v36 = vcombine.low %v308_v22, %v312_v24  ;;  %v89_v24 = vld [vmem:[#allocation2 + $0x28] sm:$0xff] }
  0x90   :  { %3239 = vmatpush1.bf16.msra.mxu0 %v4685_v44  ;;  %3403 = vmatpush1.bf16.msra.mxu1 %v4687_v45  ;;  %v268_v44 = vld [vmem:[#allocation5 + $0x540] sm:$0xff] }
  0x91   :  { %3240 = vmatprep.subr.bf16.mxu0 %v4694_v46  ;;  %3404 = vmatprep.subr.bf16.mxu1 %v4696_v47  ;;  %v272_v45 = vld [vmem:[#allocation5 + $0x560] sm:$0xff]  ;;  %v269_v46 = vld [vmem:[#allocation5 + $0x548] sm:$0xff]  ;;  %v4752_v47 = vcombine.high %v261_v38, %v265_v40 }
  0x92   :  { %v4758_v51 = vcombine.high %v268_v44, %v272_v45  ;;  %v4757_v58 = vcombine.low %v268_v44, %v272_v45  ;;  %v4759_v59 = vcombine.low %v269_v46, %v273_v48  ;;  %v328_v40 = vld [vmem:[#allocation5 + $0x720] sm:$0xff] }
  0x94   :  { %3241 = vmatpush1.bf16.msra.mxu0 %v4693_v52  ;;  %3405 = vmatpush1.bf16.msra.mxu1 %v4695_v53  ;;  %v276_v52 = vld [vmem:[#allocation5 + $0x580] sm:$0xff] }
  0x95   :  { %3242 = vmatprep.subr.bf16.mxu0 %v4702_v54  ;;  %3406 = vmatprep.subr.bf16.mxu1 %v4704_v55  ;;  %v280_v53 = vld [vmem:[#allocation5 + $0x5a0] sm:$0xff]  ;;  %v277_v54 = vld [vmem:[#allocation5 + $0x588] sm:$0xff]  ;;  %v4760_v55 = vcombine.high %v269_v46, %v273_v48 }
  0x96   :  { %v4766_v60 = vcombine.high %v276_v52, %v280_v53  ;;  %v4765_v2 = vcombine.low %v276_v52, %v280_v53  ;;  %v4767_v3 = vcombine.low %v277_v54, %v281_v56  ;;  %v336_v48 = vld [vmem:[#allocation5 + $0x760] sm:$0xff] }
  0x98   :  { %3243 = vmatpush1.bf16.msra.mxu0 %v4701_v61  ;;  %3407 = vmatpush1.bf16.msra.mxu1 %v4703_v62  ;;  %v284_v61 = vld [vmem:[#allocation5 + $0x5c0] sm:$0xff] }
  0x99   :  { %3244 = vmatprep.subr.bf16.mxu0 %v4710_v63  ;;  %3408 = vmatprep.subr.bf16.mxu1 %v4712_v0  ;;  %v288_v62 = vld [vmem:[#allocation5 + $0x5e0] sm:$0xff]  ;;  %v285_v63 = vld [vmem:[#allocation5 + $0x5c8] sm:$0xff]  ;;  %v4768_v0 = vcombine.high %v277_v54, %v281_v56 }
  0x9a   :  { %v4774_v4 = vcombine.high %v284_v61, %v288_v62  ;;  %v4773_v10 = vcombine.low %v284_v61, %v288_v62  ;;  %v4775_v11 = vcombine.low %v285_v63, %v289_v1  ;;  %v344_v56 = vld [vmem:[#allocation5 + $0x7a0] sm:$0xff] }
  0x9c   :  { %3245 = vmatpush1.bf16.msra.mxu0 %v4709_v5  ;;  %3409 = vmatpush1.bf16.msra.mxu1 %v4711_v7  ;;  %v292_v5 = vld [vmem:[#allocation5 + $0x600] sm:$0xff]  ;;  %v293_v7 = vld [vmem:[#allocation5 + $0x608] sm:$0xff] }
  0x9d   :  { %3255 = vmatprep.subr.bf16.mxu0 %v4718_v8  ;;  %3419 = vmatprep.subr.bf16.mxu1 %v4720_v9  ;;  %v4776_v8 = vcombine.high %v285_v63, %v289_v1  ;;  %v297_v9 = vld [vmem:[#allocation5 + $0x628] sm:$0xff]  ;;  %v4782_v13 = vcombine.high %v292_v5, %v296_v6  ;;  %v352_v1 = vld [vmem:[#allocation5 + $0x7e0] sm:$0xff] }
  0x9e   :  { %v4783_v20 = vcombine.low %v293_v7, %v297_v9 }
  0x9f   :  { %3247 = vmatmul.mubr.bf16.vlgmr.msra.gmra.mrb[0].mxu0 %v5632_v12  ;;  %3411 = vmatmul.mubr.bf16.vlgmr.msra.gmra.mrb[0].mxu1 %v5632_v12 }
  0xa0   :  { %3256 = vmatpush1.bf16.msra.mxu0 %v4717_v16  ;;  %3420 = vmatpush1.bf16.msra.mxu1 %v4719_v17  ;;  %v301_v16 = vld [vmem:[#allocation5 + $0x648] sm:$0xff]  ;;  %v4784_v17 = vcombine.high %v293_v7, %v297_v9  ;;  %v360_v9 = vld [vmem:[#allocation5 + $0x820] sm:$0xff] }
  0xa1   :  { %3257 = vmatprep.subr.bf16.mxu0 %v4726_v18  ;;  %3421 = vmatprep.subr.bf16.mxu1 %v4728_v19  ;;  %v305_v18 = vld [vmem:[#allocation5 + $0x668] sm:$0xff]  ;;  %v4781_v19 = vcombine.low %v292_v5, %v296_v6  ;;  %v356_v6 = vld [vmem:[#allocation5 + $0x800] sm:$0xff] }
  0xa2   :  { %3287 = vmatprep.mubr.bf16.mxu0 %v5634_v23  ;;  %3451 = vmatprep.mubr.bf16.mxu1 %v5634_v23  ;;  %v4791_v29 = vcombine.low %v301_v16, %v305_v18 }
  0xa4   :  { %3258 = vmatpush1.bf16.msra.mxu0 %v4725_v25  ;;  %3422 = vmatpush1.bf16.msra.mxu1 %v4727_v26  ;;  %v309_v25 = vld [vmem:[#allocation5 + $0x688] sm:$0xff]  ;;  %v4792_v26 = vcombine.high %v301_v16, %v305_v18  ;;  %v364_v16 = vld [vmem:[#allocation5 + $0x840] sm:$0xff]  ;;  %v4846_v18 = vcombine.high %v356_v6, %v360_v9 }
  0xa5   :  { %3259 = vmatprep.subr.bf16.mxu0 %v4734_v27  ;;  %3423 = vmatprep.subr.bf16.mxu1 %v4736_v31  ;;  %v313_v27 = vld [vmem:[#allocation5 + $0x6a8] sm:$0xff]  ;;  %v316_v31 = vld [vmem:[#allocation5 + $0x6c0] sm:$0xff] }
  0xa6   :  { %v4799_v37 = vcombine.low %v309_v25, %v313_v27  ;;  %v4806_v38 = vcombine.high %v316_v31, %v320_v32  ;;  %v4805_v44 = vcombine.low %v316_v31, %v320_v32  ;;  %v373_v32 = vld [vmem:[#allocation5 + $0x888] sm:$0xff] }
  0xa8   :  { %3260 = vmatpush1.bf16.msra.mxu0 %v4733_v33  ;;  %3424 = vmatpush1.bf16.msra.mxu1 %v4735_v34  ;;  %v317_v33 = vld [vmem:[#allocation5 + $0x6c8] sm:$0xff]  ;;  %v4800_v34 = vcombine.high %v309_v25, %v313_v27  ;;  %v5640_v25 = vpack.c.bf16 %v86_v14, %v86_v14 }
  0xa9   :  { %3261 = vmatprep.subr.bf16.mxu0 %v4742_v35  ;;  %3425 = vmatprep.subr.bf16.mxu1 %v4744_v39  ;;  %v321_v35 = vld [vmem:[#allocation5 + $0x6e8] sm:$0xff]  ;;  %v324_v39 = vld [vmem:[#allocation5 + $0x700] sm:$0xff] }
  0xaa   :  { %v4807_v45 = vcombine.low %v317_v33, %v321_v35  ;;  %v4814_v46 = vcombine.high %v324_v39, %v328_v40  ;;  %v4813_v52 = vcombine.low %v324_v39, %v328_v40  ;;  %v380_v39 = vld [vmem:[#allocation5 + $0x8c0] sm:$0xff] }
  0xab   :  { %v384_v40 = vld [vmem:[#allocation5 + $0x8e0] sm:$0xff] }
  0xac   :  { %3262 = vmatpush1.bf16.msra.mxu0 %v4741_v41  ;;  %3426 = vmatpush1.bf16.msra.mxu1 %v4743_v42  ;;  %v325_v41 = vld [vmem:[#allocation5 + $0x708] sm:$0xff]  ;;  %v4808_v42 = vcombine.high %v317_v33, %v321_v35 }
  0xad   :  { %3263 = vmatprep.subr.bf16.mxu0 %v4750_v43  ;;  %3427 = vmatprep.subr.bf16.mxu1 %v4752_v47  ;;  %v329_v43 = vld [vmem:[#allocation5 + $0x728] sm:$0xff]  ;;  %v332_v47 = vld [vmem:[#allocation5 + $0x740] sm:$0xff] }
  0xae   :  { %v4815_v53 = vcombine.low %v325_v41, %v329_v43  ;;  %v4822_v54 = vcombine.high %v332_v47, %v336_v48  ;;  %v4821_v61 = vcombine.low %v332_v47, %v336_v48  ;;  %v377_v33 = vld [vmem:[#allocation5 + $0x8a8] sm:$0xff]  ;;  %v388_v47 = vld [vmem:[#allocation5 + $0x900] sm:$0xff] }
  0xaf   :  { %v392_v48 = vld [vmem:[#allocation5 + $0x920] sm:$0xff] }
  0xb0   :  { %3264 = vmatpush1.bf16.msra.mxu0 %v4749_v49  ;;  %3428 = vmatpush1.bf16.msra.mxu1 %v4751_v50  ;;  %v333_v49 = vld [vmem:[#allocation5 + $0x748] sm:$0xff]  ;;  %v4816_v50 = vcombine.high %v325_v41, %v329_v43 }
  0xb1   :  { %3265 = vmatprep.subr.bf16.mxu0 %v4758_v51  ;;  %3429 = vmatprep.subr.bf16.mxu1 %v4760_v55  ;;  %v337_v51 = vld [vmem:[#allocation5 + $0x768] sm:$0xff]  ;;  %v340_v55 = vld [vmem:[#allocation5 + $0x780] sm:$0xff] }
  0xb2   :  { %v4823_v62 = vcombine.low %v333_v49, %v337_v51  ;;  %v4830_v63 = vcombine.high %v340_v55, %v344_v56  ;;  %v4829_v5 = vcombine.low %v340_v55, %v344_v56  ;;  %v381_v41 = vld [vmem:[#allocation5 + $0x8c8] sm:$0xff]  ;;  %v396_v55 = vld [vmem:[#allocation5 + $0x940] sm:$0xff] }
  0xb3   :  { %v400_v56 = vld [vmem:[#allocation5 + $0x960] sm:$0xff] }
  0xb4   :  { %3266 = vmatpush1.bf16.msra.mxu0 %v4757_v58  ;;  %3430 = vmatpush1.bf16.msra.mxu1 %v4759_v59  ;;  %v341_v58 = vld [vmem:[#allocation5 + $0x788] sm:$0xff]  ;;  %v4824_v59 = vcombine.high %v333_v49, %v337_v51  ;;  %v4869_v51 = vcombine.low %v380_v39, %v384_v40 }
  0xb5   :  { %3267 = vmatprep.subr.bf16.mxu0 %v4766_v60  ;;  %3431 = vmatprep.subr.bf16.mxu1 %v4768_v0  ;;  %v345_v60 = vld [vmem:[#allocation5 + $0x7a8] sm:$0xff]  ;;  %v348_v0 = vld [vmem:[#allocation5 + $0x7c0] sm:$0xff] }
  0xb6   :  { %v4831_v7 = vcombine.low %v341_v58, %v345_v60  ;;  %v4837_v15 = vcombine.low %v348_v0, %v352_v1  ;;  %v389_v49 = vld [vmem:[#allocation5 + $0x908] sm:$0xff] }
  0xb8   :  { %3268 = vmatpush1.bf16.msra.mxu0 %v4765_v2  ;;  %3432 = vmatpush1.bf16.msra.mxu1 %v4767_v3  ;;  %v349_v2 = vld [vmem:[#allocation5 + $0x7c8] sm:$0xff]  ;;  %v4832_v3 = vcombine.high %v341_v58, %v345_v60  ;;  %v4877_v60 = vcombine.low %v388_v47, %v392_v48 }
  0xb9   :  { %3269 = vmatprep.subr.bf16.mxu0 %v4774_v4  ;;  %3433 = vmatprep.subr.bf16.mxu1 %v4776_v8  ;;  %v353_v4 = vld [vmem:[#allocation5 + $0x7e8] sm:$0xff]  ;;  %v4838_v8 = vcombine.high %v348_v0, %v352_v1  ;;  %v404_v0 = vld [vmem:[#allocation5 + $0x980] sm:$0xff] }
  0xba   :  { %v397_v58 = vld [vmem:[#allocation5 + $0x948] sm:$0xff]  ;;  %v408_v1 = vld [vmem:[#allocation5 + $0x9a0] sm:$0xff] }
  0xbc   :  { %3270 = vmatpush1.bf16.msra.mxu0 %v4773_v10  ;;  %3434 = vmatpush1.bf16.msra.mxu1 %v4775_v11  ;;  %v357_v10 = vld [vmem:[#allocation5 + $0x808] sm:$0xff] }
  0xbd   :  { %3271 = vmatprep.subr.bf16.mxu0 %v4782_v13  ;;  %3435 = vmatprep.subr.bf16.mxu1 %v4784_v17  ;;  %v361_v11 = vld [vmem:[#allocation5 + $0x828] sm:$0xff]  ;;  %v4840_v13 = vcombine.high %v349_v2, %v353_v4  ;;  %v4839_v17 = vcombine.low %v349_v2, %v353_v4  ;;  %v4885_v4 = vcombine.low %v396_v55, %v400_v56 }
  0xbe   :  { %v4848_v22 = vcombine.high %v357_v10, %v361_v11  ;;  %v4847_v27 = vcombine.low %v357_v10, %v361_v11  ;;  %v405_v2 = vld [vmem:[#allocation5 + $0x988] sm:$0xff] }
  0xbf   :  { %v413_v10 = vld [vmem:[#allocation5 + $0x9c8] sm:$0xff] }
  0xc0   :  { %3272 = vmatpush1.bf16.msra.mxu0 %v4781_v19  ;;  %3436 = vmatpush1.bf16.msra.mxu1 %v4783_v20  ;;  %v368_v19 = vld [vmem:[#allocation5 + $0x860] sm:$0xff]  ;;  %v365_v20 = vld [vmem:[#allocation5 + $0x848] sm:$0xff] }
  0xc1   :  { %3273 = vmatprep.subr.bf16.mxu0 %v4790_v21  ;;  %3437 = vmatprep.subr.bf16.mxu1 %v4792_v26  ;;  %v369_v21 = vld [vmem:[#allocation5 + $0x868] sm:$0xff]  ;;  %v4845_v26 = vcombine.low %v356_v6, %v360_v9  ;;  %v4853_v35 = vcombine.low %v364_v16, %v368_v19  ;;  %v4894_v6 = vcombine.high %v404_v0, %v408_v1  ;;  %v416_v9 = vld [vmem:[#allocation5 + $0x9e0] sm:$0xff] }
  0xc2   :  { %v4856_v31 = vcombine.high %v365_v20, %v369_v21  ;;  %v417_v11 = vld [vmem:[#allocation5 + $0x9e8] sm:$0xff] }
  0xc4   :  { %3274 = vmatpush1.bf16.msra.mxu0 %v4789_v28  ;;  %3438 = vmatpush1.bf16.msra.mxu1 %v4791_v29  ;;  %v4854_v28 = vcombine.high %v364_v16, %v368_v19  ;;  %v372_v29 = vld [vmem:[#allocation5 + $0x880] sm:$0xff]  ;;  %v4904_v16 = vcombine.high %v413_v10, %v417_v11  ;;  %v421_v19 = vld [vmem:[#allocation5 + $0xa08] sm:$0xff] }
  0xc5   :  { %3275 = vmatprep.subr.bf16.mxu0 %v4798_v30  ;;  %3439 = vmatprep.subr.bf16.mxu1 %v4800_v34  ;;  %v376_v30 = vld [vmem:[#allocation5 + $0x8a0] sm:$0xff]  ;;  %v5642_v34 = vpack.c.bf16 %v89_v24, %v89_v24 }
  0xc6   :  { %v4861_v43 = vcombine.low %v372_v29, %v376_v30 }
  0xc8   :  { %3276 = vmatpush1.bf16.msra.mxu0 %v4797_v36  ;;  %3440 = vmatpush1.bf16.msra.mxu1 %v4799_v37  ;;  %v4855_v36 = vcombine.low %v365_v20, %v369_v21  ;;  %v4862_v37 = vcombine.high %v372_v29, %v376_v30  ;;  %v425_v20 = vld [vmem:[#allocation5 + $0xa28] sm:$0xff] }
  0xc9   :  { %3277 = vmatprep.subr.bf16.mxu0 %v4806_v38  ;;  %3441 = vmatprep.subr.bf16.mxu1 %v4808_v42  ;;  %v4864_v38 = vcombine.high %v373_v32, %v377_v33  ;;  %v385_v42 = vld [vmem:[#allocation5 + $0x8e8] sm:$0xff] }
  0xca   :  { %v429_v29 = vld [vmem:[#allocation5 + $0xa48] sm:$0xff] }
  0xcb   :  { %v433_v30 = vld [vmem:[#allocation5 + $0xa68] sm:$0xff] }
  0xcc   :  { %3278 = vmatpush1.bf16.msra.mxu0 %v4805_v44  ;;  %3442 = vmatpush1.bf16.msra.mxu1 %v4807_v45  ;;  %v4863_v44 = vcombine.low %v373_v32, %v377_v33  ;;  %v4870_v45 = vcombine.high %v380_v39, %v384_v40  ;;  %v4911_v32 = vcombine.low %v421_v19, %v425_v20  ;;  %v441_v39 = vld [vmem:[#allocation5 + $0xaa8] sm:$0xff] }
  0xcd   :  { %3279 = vmatprep.subr.bf16.mxu0 %v4814_v46  ;;  %3443 = vmatprep.subr.bf16.mxu1 %v4816_v50  ;;  %v4872_v46 = vcombine.high %v381_v41, %v385_v42  ;;  %v393_v50 = vld [vmem:[#allocation5 + $0x928] sm:$0xff] }
  0xd0   :  { %3280 = vmatpush1.bf16.msra.mxu0 %v4813_v52  ;;  %3444 = vmatpush1.bf16.msra.mxu1 %v4815_v53  ;;  %v4871_v52 = vcombine.low %v381_v41, %v385_v42  ;;  %v4878_v53 = vcombine.high %v388_v47, %v392_v48  ;;  %v4919_v41 = vcombine.low %v429_v29, %v433_v30  ;;  %v449_v47 = vld [vmem:[#allocation5 + $0xae8] sm:$0xff] }
  0xd1   :  { %3281 = vmatprep.subr.bf16.mxu0 %v4822_v54  ;;  %3445 = vmatprep.subr.bf16.mxu1 %v4824_v59  ;;  %v4880_v54 = vcombine.high %v389_v49, %v393_v50  ;;  %v401_v59 = vld [vmem:[#allocation5 + $0x968] sm:$0xff] }
  0xd4   :  { %3282 = vmatpush1.bf16.msra.mxu0 %v4821_v61  ;;  %3446 = vmatpush1.bf16.msra.mxu1 %v4823_v62  ;;  %v4879_v61 = vcombine.low %v389_v49, %v393_v50  ;;  %v4886_v62 = vcombine.high %v396_v55, %v400_v56  ;;  %v457_v55 = vld [vmem:[#allocation5 + $0xb28] sm:$0xff] }
  0xd5   :  { %3283 = vmatprep.subr.bf16.mxu0 %v4830_v63  ;;  %3447 = vmatprep.subr.bf16.mxu1 %v4832_v3  ;;  %v4888_v63 = vcombine.high %v397_v58, %v401_v59  ;;  %v409_v3 = vld [vmem:[#allocation5 + $0x9a8] sm:$0xff] }
  0xd6   :  { %v4895_v14 = vcombine.low %v405_v2, %v409_v3 }
  0xd8   :  { %3284 = vmatpush1.bf16.msra.mxu0 %v4829_v5  ;;  %3448 = vmatpush1.bf16.msra.mxu1 %v4831_v7  ;;  %v4887_v5 = vcombine.low %v397_v58, %v401_v59  ;;  %v4896_v7 = vcombine.high %v405_v2, %v409_v3 }
  0xd9   :  { %3285 = vmatprep.subr.bf16.mxu0 %v4838_v8  ;;  %3449 = vmatprep.subr.bf16.mxu1 %v4840_v13  ;;  %v412_v8 = vld [vmem:[#allocation5 + $0x9c0] sm:$0xff]  ;;  %v4893_v13 = vcombine.low %v404_v0, %v408_v1  ;;  %v465_v0 = vld [vmem:[#allocation5 + $0xb68] sm:$0xff] }
  0xda   :  { %v4901_v21 = vcombine.low %v412_v8, %v416_v9 }
  0xdc   :  { %3286 = vmatpush1.bf16.msra.mxu0 %v4837_v15  ;;  %3450 = vmatpush1.bf16.msra.mxu1 %v4839_v17  ;;  %v4902_v15 = vcombine.high %v412_v8, %v416_v9  ;;  %v420_v17 = vld [vmem:[#allocation5 + $0xa00] sm:$0xff]  ;;  %v473_v8 = vld [vmem:[#allocation5 + $0xba8] sm:$0xff] }
  0xdd   :  { %3296 = vmatprep.subr.bf16.mxu0 %v4846_v18  ;;  %3460 = vmatprep.subr.bf16.mxu1 %v4848_v22  ;;  %v424_v18 = vld [vmem:[#allocation5 + $0xa20] sm:$0xff]  ;;  %v4903_v22 = vcombine.low %v413_v10, %v417_v11 }
  0xde   :  { %v4910_v24 = vcombine.high %v420_v17, %v424_v18 }
  0xdf   :  { %3288 = vmatmul.mubr.bf16.vlgmr.msra.gmra.mrb[0].mxu0 %v5640_v25  ;;  %3452 = vmatmul.mubr.bf16.vlgmr.msra.gmra.mrb[0].mxu1 %v5640_v25 }
  0xe0   :  { %3297 = vmatpush1.bf16.msra.mxu0 %v4845_v26  ;;  %3461 = vmatpush1.bf16.msra.mxu1 %v4847_v27  ;;  %v4912_v26 = vcombine.high %v421_v19, %v425_v20  ;;  %v428_v27 = vld [vmem:[#allocation5 + $0xa40] sm:$0xff] }
  0xe1   :  { %3298 = vmatprep.subr.bf16.mxu0 %v4854_v28  ;;  %3462 = vmatprep.subr.bf16.mxu1 %v4856_v31  ;;  %v432_v28 = vld [vmem:[#allocation5 + $0xa60] sm:$0xff]  ;;  %v4909_v31 = vcombine.low %v420_v17, %v424_v18  ;;  %v481_v17 = vld [vmem:[#allocation5 + $0xbe8] sm:$0xff] }
  0xe2   :  { %3328 = vmatprep.mubr.bf16.mxu0 %v5642_v34  ;;  %3492 = vmatprep.mubr.bf16.mxu1 %v5642_v34  ;;  %v4918_v33 = vcombine.high %v428_v27, %v432_v28  ;;  %v4917_v40 = vcombine.low %v428_v27, %v432_v28  ;;  %v489_v27 = vld [vmem:[#allocation5 + $0xc28] sm:$0xff] }
  0xe4   :  { %3299 = vmatpush1.bf16.msra.mxu0 %v4853_v35  ;;  %3463 = vmatpush1.bf16.msra.mxu1 %v4855_v36  ;;  %v4920_v35 = vcombine.high %v429_v29, %v433_v30  ;;  %v436_v36 = vld [vmem:[#allocation5 + $0xa80] sm:$0xff] }
  0xe5   :  { %3300 = vmatprep.subr.bf16.mxu0 %v4862_v37  ;;  %3464 = vmatprep.subr.bf16.mxu1 %v4864_v38  ;;  %v440_v37 = vld [vmem:[#allocation5 + $0xaa0] sm:$0xff]  ;;  %v437_v38 = vld [vmem:[#allocation5 + $0xa88] sm:$0xff] }
  0xe6   :  { %v4926_v42 = vcombine.high %v436_v36, %v440_v37  ;;  %v4925_v48 = vcombine.low %v436_v36, %v440_v37  ;;  %v4927_v49 = vcombine.low %v437_v38, %v441_v39  ;;  %v88_v29 = vld [vmem:[#allocation2 + $0x20] sm:$0xff]  ;;  %v493_v37 = vld [vmem:[#allocation5 + $0xc48] sm:$0xff] }
  0xe7   :  { %v5648_v36 = vpack.c.bf16 %v88_v29, %v88_v29 }
  0xe8   :  { %3301 = vmatpush1.bf16.msra.mxu0 %v4861_v43  ;;  %3465 = vmatpush1.bf16.msra.mxu1 %v4863_v44  ;;  %v4928_v43 = vcombine.high %v437_v38, %v441_v39  ;;  %v444_v44 = vld [vmem:[#allocation5 + $0xac0] sm:$0xff]  ;;  %v497_v38 = vld [vmem:[#allocation5 + $0xc68] sm:$0xff]  ;;  %v91_v39 = vld [vmem:[#allocation2 + $0x38] sm:$0xff] }
  0xe9   :  { %3302 = vmatprep.subr.bf16.mxu0 %v4870_v45  ;;  %3466 = vmatprep.subr.bf16.mxu1 %v4872_v46  ;;  %v448_v45 = vld [vmem:[#allocation5 + $0xae0] sm:$0xff]  ;;  %v445_v46 = vld [vmem:[#allocation5 + $0xac8] sm:$0xff] }
  0xea   :  { %v4934_v50 = vcombine.high %v444_v44, %v448_v45  ;;  %v4933_v56 = vcombine.low %v444_v44, %v448_v45  ;;  %v4935_v58 = vcombine.low %v445_v46, %v449_v47  ;;  %v500_v44 = vld [vmem:[#allocation5 + $0xc80] sm:$0xff] }
  0xeb   :  { %v504_v45 = vld [vmem:[#allocation5 + $0xca0] sm:$0xff] }
  0xec   :  { %3303 = vmatpush1.bf16.msra.mxu0 %v4869_v51  ;;  %3467 = vmatpush1.bf16.msra.mxu1 %v4871_v52  ;;  %v4936_v51 = vcombine.high %v445_v46, %v449_v47  ;;  %v452_v52 = vld [vmem:[#allocation5 + $0xb00] sm:$0xff]  ;;  %v5650_v46 = vpack.c.bf16 %v91_v39, %v91_v39  ;;  %v501_v47 = vld [vmem:[#allocation5 + $0xc88] sm:$0xff] }
  0xed   :  { %3304 = vmatprep.subr.bf16.mxu0 %v4878_v53  ;;  %3468 = vmatprep.subr.bf16.mxu1 %v4880_v54  ;;  %v456_v53 = vld [vmem:[#allocation5 + $0xb20] sm:$0xff]  ;;  %v453_v54 = vld [vmem:[#allocation5 + $0xb08] sm:$0xff] }
  0xee   :  { %v4942_v59 = vcombine.high %v452_v52, %v456_v53  ;;  %v4941_v1 = vcombine.low %v452_v52, %v456_v53  ;;  %v4943_v2 = vcombine.low %v453_v54, %v457_v55  ;;  %v508_v53 = vld [vmem:[#allocation5 + $0xcc0] sm:$0xff] }
  0xf0   :  { %3305 = vmatpush1.bf16.msra.mxu0 %v4877_v60  ;;  %3469 = vmatpush1.bf16.msra.mxu1 %v4879_v61  ;;  %v4944_v60 = vcombine.high %v453_v54, %v457_v55  ;;  %v460_v61 = vld [vmem:[#allocation5 + $0xb40] sm:$0xff]  ;;  %v509_v55 = vld [vmem:[#allocation5 + $0xcc8] sm:$0xff] }
  0xf1   :  { %3306 = vmatprep.subr.bf16.mxu0 %v4886_v62  ;;  %3470 = vmatprep.subr.bf16.mxu1 %v4888_v63  ;;  %v464_v62 = vld [vmem:[#allocation5 + $0xb60] sm:$0xff]  ;;  %v461_v63 = vld [vmem:[#allocation5 + $0xb48] sm:$0xff] }
  0xf2   :  { %v4950_v3 = vcombine.high %v460_v61, %v464_v62  ;;  %v4949_v9 = vcombine.low %v460_v61, %v464_v62  ;;  %v4951_v10 = vcombine.low %v461_v63, %v465_v0  ;;  %v512_v54 = vld [vmem:[#allocation5 + $0xce0] sm:$0xff] }
  0xf3   :  { %v516_v62 = vld [vmem:[#allocation5 + $0xd00] sm:$0xff] }
  0xf4   :  { %3307 = vmatpush1.bf16.msra.mxu0 %v4885_v4  ;;  %3471 = vmatpush1.bf16.msra.mxu1 %v4887_v5  ;;  %v4952_v4 = vcombine.high %v461_v63, %v465_v0  ;;  %v468_v5 = vld [vmem:[#allocation5 + $0xb80] sm:$0xff]  ;;  %v517_v0 = vld [vmem:[#allocation5 + $0xd08] sm:$0xff] }
  0xf5   :  { %3308 = vmatprep.subr.bf16.mxu0 %v4894_v6  ;;  %3472 = vmatprep.subr.bf16.mxu1 %v4896_v7  ;;  %v472_v6 = vld [vmem:[#allocation5 + $0xba0] sm:$0xff]  ;;  %v469_v7 = vld [vmem:[#allocation5 + $0xb88] sm:$0xff] }
  0xf6   :  { %v4958_v11 = vcombine.high %v468_v5, %v472_v6  ;;  %v4957_v18 = vcombine.low %v468_v5, %v472_v6  ;;  %v4959_v19 = vcombine.low %v469_v7, %v473_v8  ;;  %v520_v63 = vld [vmem:[#allocation5 + $0xd20] sm:$0xff] }
  0xf7   :  { %v524_v6 = vld [vmem:[#allocation5 + $0xd40] sm:$0xff] }
  0xf8   :  { %3309 = vmatpush1.bf16.msra.mxu0 %v4893_v13  ;;  %3473 = vmatpush1.bf16.msra.mxu1 %v4895_v14  ;;  %v4960_v13 = vcombine.high %v469_v7, %v473_v8  ;;  %v476_v14 = vld [vmem:[#allocation5 + $0xbc0] sm:$0xff]  ;;  %v525_v8 = vld [vmem:[#allocation5 + $0xd48] sm:$0xff] }
  0xf9   :  { %3310 = vmatprep.subr.bf16.mxu0 %v4902_v15  ;;  %3474 = vmatprep.subr.bf16.mxu1 %v4904_v16  ;;  %v480_v15 = vld [vmem:[#allocation5 + $0xbe0] sm:$0xff]  ;;  %v477_v16 = vld [vmem:[#allocation5 + $0xbc8] sm:$0xff] }
  0xfa   :  { %v4966_v20 = vcombine.high %v476_v14, %v480_v15  ;;  %v4965_v28 = vcombine.low %v476_v14, %v480_v15  ;;  %v4967_v30 = vcombine.low %v477_v16, %v481_v17  ;;  %v528_v7 = vld [vmem:[#allocation5 + $0xd60] sm:$0xff] }
  0xfb   :  { %v532_v15 = vld [vmem:[#allocation5 + $0xd80] sm:$0xff] }
  0xfc   :  { %3311 = vmatpush1.bf16.msra.mxu0 %v4901_v21  ;;  %3475 = vmatpush1.bf16.msra.mxu1 %v4903_v22  ;;  %v4968_v21 = vcombine.high %v477_v16, %v481_v17  ;;  %v484_v22 = vld [vmem:[#allocation5 + $0xc00] sm:$0xff]  ;;  %v533_v17 = vld [vmem:[#allocation5 + $0xd88] sm:$0xff] }
  0xfd   :  { %3312 = vmatprep.subr.bf16.mxu0 %v4910_v24  ;;  %3476 = vmatprep.subr.bf16.mxu1 %v4912_v26  ;;  %v488_v24 = vld [vmem:[#allocation5 + $0xc20] sm:$0xff]  ;;  %v485_v26 = vld [vmem:[#allocation5 + $0xc08] sm:$0xff] }
  0xfe   :  { %v536_v16 = vld [vmem:[#allocation5 + $0xda0] sm:$0xff] }
  0xff   :  { %v5021_v29 = vcombine.low %v532_v15, %v536_v16 }
 0x100   :  { %3313 = vmatpush1.bf16.msra.mxu0 %v4909_v31  ;;  %3477 = vmatpush1.bf16.msra.mxu1 %v4911_v32  ;;  %v4974_v31 = vcombine.high %v484_v22, %v488_v24  ;;  %v4976_v32 = vcombine.high %v485_v26, %v489_v27 }
 0x101   :  { %3314 = vmatprep.subr.bf16.mxu0 %v4918_v33  ;;  %3478 = vmatprep.subr.bf16.mxu1 %v4920_v35  ;;  %v492_v33 = vld [vmem:[#allocation5 + $0xc40] sm:$0xff] }
 0x102   :  { %v496_v35 = vld [vmem:[#allocation5 + $0xc60] sm:$0xff] }
 0x104   :  { %3315 = vmatpush1.bf16.msra.mxu0 %v4917_v40  ;;  %3479 = vmatpush1.bf16.msra.mxu1 %v4919_v41  ;;  %v4973_v40 = vcombine.low %v484_v22, %v488_v24  ;;  %v4975_v41 = vcombine.low %v485_v26, %v489_v27  ;;  %v540_v24 = vld [vmem:[#allocation5 + $0xdc0] sm:$0xff]  ;;  %v541_v27 = vld [vmem:[#allocation5 + $0xdc8] sm:$0xff] }
 0x105   :  { %3316 = vmatprep.subr.bf16.mxu0 %v4926_v42  ;;  %3480 = vmatprep.subr.bf16.mxu1 %v4928_v43  ;;  %v4982_v42 = vcombine.high %v492_v33, %v496_v35  ;;  %v4984_v43 = vcombine.high %v493_v37, %v497_v38  ;;  %v544_v26 = vld [vmem:[#allocation5 + $0xde0] sm:$0xff] }
 0x106   :  { %v5029_v39 = vcombine.low %v540_v24, %v544_v26 }
 0x108   :  { %3317 = vmatpush1.bf16.msra.mxu0 %v4925_v48  ;;  %3481 = vmatpush1.bf16.msra.mxu1 %v4927_v49  ;;  %v505_v48 = vld [vmem:[#allocation5 + $0xca8] sm:$0xff]  ;;  %v4981_v49 = vcombine.low %v492_v33, %v496_v35  ;;  %v548_v33 = vld [vmem:[#allocation5 + $0xe00] sm:$0xff] }
 0x109   :  { %3318 = vmatprep.subr.bf16.mxu0 %v4934_v50  ;;  %3482 = vmatprep.subr.bf16.mxu1 %v4936_v51  ;;  %v4983_v50 = vcombine.low %v493_v37, %v497_v38  ;;  %v4990_v51 = vcombine.high %v500_v44, %v504_v45  ;;  %v4992_v52 = vcombine.high %v501_v47, %v505_v48  ;;  %v552_v35 = vld [vmem:[#allocation5 + $0xe20] sm:$0xff]  ;;  %v549_v37 = vld [vmem:[#allocation5 + $0xe08] sm:$0xff] }
 0x10a   :  { %v553_v38 = vld [vmem:[#allocation5 + $0xe28] sm:$0xff] }
 0x10c   :  { %3319 = vmatpush1.bf16.msra.mxu0 %v4933_v56  ;;  %3483 = vmatpush1.bf16.msra.mxu1 %v4935_v58  ;;  %v513_v56 = vld [vmem:[#allocation5 + $0xce8] sm:$0xff]  ;;  %v4989_v58 = vcombine.low %v500_v44, %v504_v45  ;;  %v560_v44 = vld [vmem:[#allocation5 + $0xe60] sm:$0xff] }
 0x10d   :  { %3320 = vmatprep.subr.bf16.mxu0 %v4942_v59  ;;  %3484 = vmatprep.subr.bf16.mxu1 %v4944_v60  ;;  %v4991_v59 = vcombine.low %v501_v47, %v505_v48  ;;  %v4998_v60 = vcombine.high %v508_v53, %v512_v54  ;;  %v5000_v61 = vcombine.high %v509_v55, %v513_v56  ;;  %v557_v45 = vld [vmem:[#allocation5 + $0xe48] sm:$0xff] }
 0x10e   :  { %v561_v47 = vld [vmem:[#allocation5 + $0xe68] sm:$0xff]  ;;  %v5037_v48 = vcombine.low %v548_v33, %v552_v35 }
 0x110   :  { %3321 = vmatpush1.bf16.msra.mxu0 %v4941_v1  ;;  %3485 = vmatpush1.bf16.msra.mxu1 %v4943_v2  ;;  %v521_v1 = vld [vmem:[#allocation5 + $0xd28] sm:$0xff]  ;;  %v4997_v2 = vcombine.low %v508_v53, %v512_v54  ;;  %v568_v53 = vld [vmem:[#allocation5 + $0xea0] sm:$0xff] }
 0x111   :  { %3322 = vmatprep.subr.bf16.mxu0 %v4950_v3  ;;  %3486 = vmatprep.subr.bf16.mxu1 %v4952_v4  ;;  %v4999_v3 = vcombine.low %v509_v55, %v513_v56  ;;  %v5006_v4 = vcombine.high %v516_v62, %v520_v63  ;;  %v5008_v5 = vcombine.high %v517_v0, %v521_v1  ;;  %v565_v54 = vld [vmem:[#allocation5 + $0xe88] sm:$0xff] }
 0x112   :  { %v569_v55 = vld [vmem:[#allocation5 + $0xea8] sm:$0xff] }
 0x114   :  { %3323 = vmatpush1.bf16.msra.mxu0 %v4949_v9  ;;  %3487 = vmatpush1.bf16.msra.mxu1 %v4951_v10  ;;  %v529_v9 = vld [vmem:[#allocation5 + $0xd68] sm:$0xff]  ;;  %v5005_v10 = vcombine.low %v516_v62, %v520_v63  ;;  %v576_v62 = vld [vmem:[#allocation5 + $0xee0] sm:$0xff] }
 0x115   :  { %3324 = vmatprep.subr.bf16.mxu0 %v4958_v11  ;;  %3488 = vmatprep.subr.bf16.mxu1 %v4960_v13  ;;  %v5007_v11 = vcombine.low %v517_v0, %v521_v1  ;;  %v5014_v13 = vcombine.high %v524_v6, %v528_v7  ;;  %v5016_v14 = vcombine.high %v525_v8, %v529_v9  ;;  %v573_v63 = vld [vmem:[#allocation5 + $0xec8] sm:$0xff] }
 0x116   :  { %v577_v0 = vld [vmem:[#allocation5 + $0xee8] sm:$0xff] }
 0x118   :  { %3325 = vmatpush1.bf16.msra.mxu0 %v4957_v18  ;;  %3489 = vmatpush1.bf16.msra.mxu1 %v4959_v19  ;;  %v537_v18 = vld [vmem:[#allocation5 + $0xda8] sm:$0xff]  ;;  %v5013_v19 = vcombine.low %v524_v6, %v528_v7  ;;  %v584_v6 = vld [vmem:[#allocation5 + $0xf20] sm:$0xff] }
 0x119   :  { %3326 = vmatprep.subr.bf16.mxu0 %v4966_v20  ;;  %3490 = vmatprep.subr.bf16.mxu1 %v4968_v21  ;;  %v5015_v20 = vcombine.low %v525_v8, %v529_v9  ;;  %v5022_v21 = vcombine.high %v532_v15, %v536_v16  ;;  %v5024_v22 = vcombine.high %v533_v17, %v537_v18  ;;  %v581_v7 = vld [vmem:[#allocation5 + $0xf08] sm:$0xff]  ;;  %v592_v15 = vld [vmem:[#allocation5 + $0xf60] sm:$0xff] }
 0x11a   :  { %v585_v8 = vld [vmem:[#allocation5 + $0xf28] sm:$0xff] }
 0x11b   :  { %v589_v16 = vld [vmem:[#allocation5 + $0xf48] sm:$0xff] }
 0x11c   :  { %3327 = vmatpush1.bf16.msra.mxu0 %v4965_v28  ;;  %3491 = vmatpush1.bf16.msra.mxu1 %v4967_v30  ;;  %v545_v28 = vld [vmem:[#allocation5 + $0xde8] sm:$0xff]  ;;  %v5023_v30 = vcombine.low %v533_v17, %v537_v18 }
 0x11d   :  { %3337 = vmatprep.subr.bf16.mxu0 %v4974_v31  ;;  %3501 = vmatprep.subr.bf16.mxu1 %v4976_v32  ;;  %v5030_v31 = vcombine.high %v540_v24, %v544_v26  ;;  %v5032_v32 = vcombine.high %v541_v27, %v545_v28  ;;  %v593_v17 = vld [vmem:[#allocation5 + $0xf68] sm:$0xff]  ;;  %v600_v24 = vld [vmem:[#allocation5 + $0xfa0] sm:$0xff] }
 0x11e   :  { %v597_v26 = vld [vmem:[#allocation5 + $0xf88] sm:$0xff] }
 0x11f   :  { %3329 = vmatmul.mubr.bf16.vlgmr.msra.gmra.mrb[0].mxu0 %v5648_v36  ;;  %3493 = vmatmul.mubr.bf16.vlgmr.msra.gmra.mrb[0].mxu1 %v5648_v36 }
 0x120   :  { %3338 = vmatpush1.bf16.msra.mxu0 %v4973_v40  ;;  %3502 = vmatpush1.bf16.msra.mxu1 %v4975_v41  ;;  %v5031_v40 = vcombine.low %v541_v27, %v545_v28  ;;  %v5038_v41 = vcombine.high %v548_v33, %v552_v35  ;;  %v601_v27 = vld [vmem:[#allocation5 + $0xfa8] sm:$0xff]  ;;  %v608_v33 = vld [vmem:[#allocation5 + $0xfe0] sm:$0xff] }
 0x121   :  { %3339 = vmatprep.subr.bf16.mxu0 %v4982_v42  ;;  %3503 = vmatprep.subr.bf16.mxu1 %v4984_v43  ;;  %v5040_v42 = vcombine.high %v549_v37, %v553_v38  ;;  %v556_v43 = vld [vmem:[#allocation5 + $0xe40] sm:$0xff]  ;;  %v605_v35 = vld [vmem:[#allocation5 + $0xfc8] sm:$0xff] }
 0x122   :  { %3369 = vmatprep.mubr.bf16.mxu0 %v5650_v46  ;;  %3533 = vmatprep.mubr.bf16.mxu1 %v5650_v46  ;;  %v5045_v56 = vcombine.low %v556_v43, %v560_v44 }
 0x124   :  { %3340 = vmatpush1.bf16.msra.mxu0 %v4981_v49  ;;  %3504 = vmatpush1.bf16.msra.mxu1 %v4983_v50  ;;  %v5039_v49 = vcombine.low %v549_v37, %v553_v38  ;;  %v5046_v50 = vcombine.high %v556_v43, %v560_v44  ;;  %v609_v37 = vld [vmem:[#allocation5 + $0xfe8] sm:$0xff]  ;;  %v106_v43 = vld [vmem:[#allocation5 + $0x30] sm:$0xff]  ;;  %v103_v44 = vld [vmem:[#allocation5 + $0x18] sm:$0xff] }
 0x125   :  { %3341 = vmatprep.subr.bf16.mxu0 %v4990_v51  ;;  %3505 = vmatprep.subr.bf16.mxu1 %v4992_v52  ;;  %v5048_v51 = vcombine.high %v557_v45, %v561_v47  ;;  %v564_v52 = vld [vmem:[#allocation5 + $0xe80] sm:$0xff] }
 0x126   :  { %v5053_v1 = vcombine.low %v564_v52, %v568_v53 }
 0x128   :  { %3342 = vmatpush1.bf16.msra.mxu0 %v4989_v58  ;;  %3506 = vmatpush1.bf16.msra.mxu1 %v4991_v59  ;;  %v5047_v58 = vcombine.low %v557_v45, %v561_v47  ;;  %v5054_v59 = vcombine.high %v564_v52, %v568_v53  ;;  %v107_v45 = vld [vmem:[#allocation5 + $0x38] sm:$0xff]  ;;  %v110_v52 = vld [vmem:[#allocation5 + $0x50] sm:$0xff] }
 0x129   :  { %3343 = vmatprep.subr.bf16.mxu0 %v4998_v60  ;;  %3507 = vmatprep.subr.bf16.mxu1 %v5000_v61  ;;  %v5056_v60 = vcombine.high %v565_v54, %v569_v55  ;;  %v572_v61 = vld [vmem:[#allocation5 + $0xec0] sm:$0xff]  ;;  %v114_v53 = vld [vmem:[#allocation5 + $0x70] sm:$0xff] }
 0x12a   :  { %v5061_v9 = vcombine.low %v572_v61, %v576_v62 }
 0x12c   :  { %3344 = vmatpush1.bf16.msra.mxu0 %v4997_v2  ;;  %3508 = vmatpush1.bf16.msra.mxu1 %v4999_v3  ;;  %v5055_v2 = vcombine.low %v565_v54, %v569_v55  ;;  %v5062_v3 = vcombine.high %v572_v61, %v576_v62  ;;  %v111_v55 = vld [vmem:[#allocation5 + $0x58] sm:$0xff]  ;;  %v118_v62 = vld [vmem:[#allocation5 + $0x90] sm:$0xff] }
 0x12d   :  { %3345 = vmatprep.subr.bf16.mxu0 %v5006_v4  ;;  %3509 = vmatprep.subr.bf16.mxu1 %v5008_v5  ;;  %v5064_v4 = vcombine.high %v573_v63, %v577_v0  ;;  %v580_v5 = vld [vmem:[#allocation5 + $0xf00] sm:$0xff] }
 0x12e   :  { %v5069_v18 = vcombine.low %v580_v5, %v584_v6 }
 0x130   :  { %3346 = vmatpush1.bf16.msra.mxu0 %v5005_v10  ;;  %3510 = vmatpush1.bf16.msra.mxu1 %v5007_v11  ;;  %v5063_v10 = vcombine.low %v573_v63, %v577_v0  ;;  %v5070_v11 = vcombine.high %v580_v5, %v584_v6  ;;  %v122_v63 = vld [vmem:[#allocation5 + $0xb0] sm:$0xff]  ;;  %v119_v0 = vld [vmem:[#allocation5 + $0x98] sm:$0xff] }
 0x131   :  { %3347 = vmatprep.subr.bf16.mxu0 %v5014_v13  ;;  %3511 = vmatprep.subr.bf16.mxu1 %v5016_v14  ;;  %v5072_v13 = vcombine.high %v581_v7, %v585_v8  ;;  %v588_v14 = vld [vmem:[#allocation5 + $0xf40] sm:$0xff]  ;;  %v126_v6 = vld [vmem:[#allocation5 + $0xd0] sm:$0xff] }
 0x132   :  { %v5077_v28 = vcombine.low %v588_v14, %v592_v15 }
 0x134   :  { %3348 = vmatpush1.bf16.msra.mxu0 %v5013_v19  ;;  %3512 = vmatpush1.bf16.msra.mxu1 %v5015_v20  ;;  %v5071_v19 = vcombine.low %v581_v7, %v585_v8  ;;  %v5078_v20 = vcombine.high %v588_v14, %v592_v15  ;;  %v130_v7 = vld [vmem:[#allocation5 + $0xf0] sm:$0xff]  ;;  %v127_v8 = vld [vmem:[#allocation5 + $0xd8] sm:$0xff] }
 0x135   :  { %3349 = vmatprep.subr.bf16.mxu0 %v5022_v21  ;;  %3513 = vmatprep.subr.bf16.mxu1 %v5024_v22  ;;  %v5080_v21 = vcombine.high %v589_v16, %v593_v17  ;;  %v596_v22 = vld [vmem:[#allocation5 + $0xf80] sm:$0xff]  ;;  %v134_v15 = vld [vmem:[#allocation5 + $0x110] sm:$0xff] }
 0x136   :  { %v5085_v38 = vcombine.low %v596_v22, %v600_v24 }
 0x138   :  { %3350 = vmatpush1.bf16.msra.mxu0 %v5021_v29  ;;  %3514 = vmatpush1.bf16.msra.mxu1 %v5023_v30  ;;  %v5079_v29 = vcombine.low %v589_v16, %v593_v17  ;;  %v5086_v30 = vcombine.high %v596_v22, %v600_v24  ;;  %v138_v16 = vld [vmem:[#allocation5 + $0x130] sm:$0xff]  ;;  %v135_v17 = vld [vmem:[#allocation5 + $0x118] sm:$0xff] }
 0x139   :  { %3351 = vmatprep.subr.bf16.mxu0 %v5030_v31  ;;  %3515 = vmatprep.subr.bf16.mxu1 %v5032_v32  ;;  %v5088_v31 = vcombine.high %v597_v26, %v601_v27  ;;  %v604_v32 = vld [vmem:[#allocation5 + $0xfc0] sm:$0xff]  ;;  %v142_v22 = vld [vmem:[#allocation5 + $0x150] sm:$0xff] }
 0x13a   :  { %v5093_v47 = vcombine.low %v604_v32, %v608_v33  ;;  %v146_v24 = vld [vmem:[#allocation5 + $0x170] sm:$0xff] }
 0x13c   :  { %3352 = vmatpush1.bf16.msra.mxu0 %v5029_v39  ;;  %3516 = vmatpush1.bf16.msra.mxu1 %v5031_v40  ;;  %v5087_v39 = vcombine.low %v597_v26, %v601_v27  ;;  %v5094_v40 = vcombine.high %v604_v32, %v608_v33  ;;  %v143_v26 = vld [vmem:[#allocation5 + $0x158] sm:$0xff]  ;;  %v150_v32 = vld [vmem:[#allocation5 + $0x190] sm:$0xff] }
 0x13d   :  { %3353 = vmatprep.subr.bf16.mxu0 %v5038_v41  ;;  %3517 = vmatprep.subr.bf16.mxu1 %v5040_v42  ;;  %v5096_v41 = vcombine.high %v605_v35, %v609_v37  ;;  %v102_v42 = vld [vmem:[#allocation5 + $0x10] sm:$0xff]  ;;  %v147_v27 = vld [vmem:[#allocation5 + $0x178] sm:$0xff] }
 0x13e   :  { %v154_v33 = vld [vmem:[#allocation5 + $0x1b0] sm:$0xff] }
 0x140   :  { %3354 = vmatpush1.bf16.msra.mxu0 %v5037_v48  ;;  %3518 = vmatpush1.bf16.msra.mxu1 %v5039_v49  ;;  %v90_v48 = vld [vmem:[#allocation2 + $0x30] sm:$0xff]  ;;  %v5095_v49 = vcombine.low %v605_v35, %v609_v37  ;;  %v151_v35 = vld [vmem:[#allocation5 + $0x198] sm:$0xff] }
 0x141   :  { %3355 = vmatprep.subr.bf16.mxu0 %v5046_v50  ;;  %3519 = vmatprep.subr.bf16.mxu1 %v5048_v51  ;;  %v4594_v50 = vcombine.high %v102_v42, %v106_v43  ;;  %v4596_v51 = vcombine.high %v103_v44, %v107_v45  ;;  %v5656_v54 = vpack.c.bf16 %v90_v48, %v90_v48  ;;  %v155_v37 = vld [vmem:[#allocation5 + $0x1b8] sm:$0xff] }
 0x142   :  { %v4643_v48 = vcombine.low %v151_v35, %v155_v37 }
 0x144   :  { %3356 = vmatpush1.bf16.msra.mxu0 %v5045_v56  ;;  %3520 = vmatpush1.bf16.msra.mxu1 %v5047_v58  ;;  %v115_v56 = vld [vmem:[#allocation5 + $0x78] sm:$0xff]  ;;  %v4593_v58 = vcombine.low %v102_v42, %v106_v43  ;;  %v158_v42 = vld [vmem:[#allocation5 + $0x1d0] sm:$0xff] }
 0x145   :  { %3357 = vmatprep.subr.bf16.mxu0 %v5054_v59  ;;  %3521 = vmatprep.subr.bf16.mxu1 %v5056_v60  ;;  %v4595_v59 = vcombine.low %v103_v44, %v107_v45  ;;  %v4602_v60 = vcombine.high %v110_v52, %v114_v53  ;;  %v4604_v61 = vcombine.high %v111_v55, %v115_v56  ;;  %v162_v43 = vld [vmem:[#allocation5 + $0x1f0] sm:$0xff]  ;;  %v159_v44 = vld [vmem:[#allocation5 + $0x1d8] sm:$0xff] }
 0x146   :  { %v163_v45 = vld [vmem:[#allocation5 + $0x1f8] sm:$0xff] }
 0x148   :  { %3358 = vmatpush1.bf16.msra.mxu0 %v5053_v1  ;;  %3522 = vmatpush1.bf16.msra.mxu1 %v5055_v2  ;;  %v123_v1 = vld [vmem:[#allocation5 + $0xb8] sm:$0xff]  ;;  %v4601_v2 = vcombine.low %v110_v52, %v114_v53  ;;  %v170_v52 = vld [vmem:[#allocation5 + $0x230] sm:$0xff] }
 0x149   :  { %3359 = vmatprep.subr.bf16.mxu0 %v5062_v3  ;;  %3523 = vmatprep.subr.bf16.mxu1 %v5064_v4  ;;  %v4603_v3 = vcombine.low %v111_v55, %v115_v56  ;;  %v4610_v4 = vcombine.high %v118_v62, %v122_v63  ;;  %v4612_v5 = vcombine.high %v119_v0, %v123_v1  ;;  %v167_v53 = vld [vmem:[#allocation5 + $0x218] sm:$0xff] }
 0x14a   :  { %v171_v55 = vld [vmem:[#allocation5 + $0x238] sm:$0xff]  ;;  %v4649_v56 = vcombine.low %v158_v42, %v162_v43 }
 0x14c   :  { %3360 = vmatpush1.bf16.msra.mxu0 %v5061_v9  ;;  %3524 = vmatpush1.bf16.msra.mxu1 %v5063_v10  ;;  %v131_v9 = vld [vmem:[#allocation5 + $0xf8] sm:$0xff]  ;;  %v4609_v10 = vcombine.low %v118_v62, %v122_v63  ;;  %v178_v62 = vld [vmem:[#allocation5 + $0x270] sm:$0xff] }
 0x14d   :  { %3361 = vmatprep.subr.bf16.mxu0 %v5070_v11  ;;  %3525 = vmatprep.subr.bf16.mxu1 %v5072_v13  ;;  %v4611_v11 = vcombine.low %v119_v0, %v123_v1  ;;  %v4618_v13 = vcombine.high %v126_v6, %v130_v7  ;;  %v4620_v14 = vcombine.high %v127_v8, %v131_v9  ;;  %v175_v63 = vld [vmem:[#allocation5 + $0x258] sm:$0xff] }
 0x14e   :  { %v179_v0 = vld [vmem:[#allocation5 + $0x278] sm:$0xff] }
 0x150   :  { %3362 = vmatpush1.bf16.msra.mxu0 %v5069_v18  ;;  %3526 = vmatpush1.bf16.msra.mxu1 %v5071_v19  ;;  %v139_v18 = vld [vmem:[#allocation5 + $0x138] sm:$0xff]  ;;  %v4617_v19 = vcombine.low %v126_v6, %v130_v7  ;;  %v186_v6 = vld [vmem:[#allocation5 + $0x2b0] sm:$0xff] }
 0x151   :  { %3363 = vmatprep.subr.bf16.mxu0 %v5078_v20  ;;  %3527 = vmatprep.subr.bf16.mxu1 %v5080_v21  ;;  %v4619_v20 = vcombine.low %v127_v8, %v131_v9  ;;  %v4626_v21 = vcombine.high %v134_v15, %v138_v16  ;;  %v183_v7 = vld [vmem:[#allocation5 + $0x298] sm:$0xff] }
 0x152   :  { %v187_v8 = vld [vmem:[#allocation5 + $0x2b8] sm:$0xff] }
 0x154   :  { %3364 = vmatpush1.bf16.msra.mxu0 %v5077_v28  ;;  %3528 = vmatpush1.bf16.msra.mxu1 %v5079_v29  ;;  %v4625_v28 = vcombine.low %v134_v15, %v138_v16  ;;  %v4627_v29 = vcombine.low %v135_v17, %v139_v18  ;;  %v194_v15 = vld [vmem:[#allocation5 + $0x2f0] sm:$0xff]  ;;  %v191_v16 = vld [vmem:[#allocation5 + $0x2d8] sm:$0xff] }
 0x155   :  { %3365 = vmatprep.subr.bf16.mxu0 %v5086_v30  ;;  %3529 = vmatprep.subr.bf16.mxu1 %v5088_v31  ;;  %v4634_v30 = vcombine.high %v142_v22, %v146_v24  ;;  %v4636_v31 = vcombine.high %v143_v26, %v147_v27 }
 0x158   :  { %3366 = vmatpush1.bf16.msra.mxu0 %v5085_v38  ;;  %3530 = vmatpush1.bf16.msra.mxu1 %v5087_v39  ;;  %v4633_v38 = vcombine.low %v142_v22, %v146_v24  ;;  %v4635_v39 = vcombine.low %v143_v26, %v147_v27  ;;  %v202_v22 = vld [vmem:[#allocation5 + $0x330] sm:$0xff]  ;;  %v199_v24 = vld [vmem:[#allocation5 + $0x318] sm:$0xff] }
 0x159   :  { %3367 = vmatprep.subr.bf16.mxu0 %v5094_v40  ;;  %3531 = vmatprep.subr.bf16.mxu1 %v5096_v41  ;;  %v4642_v40 = vcombine.high %v150_v32, %v154_v33  ;;  %v4644_v41 = vcombine.high %v151_v35, %v155_v37  ;;  %v203_v26 = vld [vmem:[#allocation5 + $0x338] sm:$0xff] }
 0x15a   :  { %v211_v35 = vld [vmem:[#allocation5 + $0x378] sm:$0xff] }
 0x15c   :  { %3368 = vmatpush1.bf16.msra.mxu0 %v5093_v47  ;;  %3532 = vmatpush1.bf16.msra.mxu1 %v5095_v49  ;;  %v4641_v47 = vcombine.low %v150_v32, %v154_v33  ;;  %v4650_v49 = vcombine.high %v158_v42, %v162_v43  ;;  %v210_v32 = vld [vmem:[#allocation5 + $0x370] sm:$0xff]  ;;  %v207_v33 = vld [vmem:[#allocation5 + $0x358] sm:$0xff] }
 0x15d   :  { %3542 = vmatprep.subr.bf16.mxu0 %v4594_v50  ;;  %3706 = vmatprep.subr.bf16.mxu1 %v4596_v51  ;;  %v4652_v50 = vcombine.high %v159_v44, %v163_v45  ;;  %v166_v51 = vld [vmem:[#allocation5 + $0x210] sm:$0xff]  ;;  %v215_v43 = vld [vmem:[#allocation5 + $0x398] sm:$0xff] }
 0x15e   :  { %v4657_v1 = vcombine.low %v166_v51, %v170_v52  ;;  %v218_v42 = vld [vmem:[#allocation5 + $0x3b0] sm:$0xff] }
 0x15f   :  { %3370 = vmatmul.mubr.bf16.vlgmr.msra.gmra.mrb[0].mxu0 %v5656_v54  ;;  %3534 = vmatmul.mubr.bf16.vlgmr.msra.gmra.mrb[0].mxu1 %v5656_v54 }
 0x160   :  { %3543 = vmatpush1.bf16.msra.mxu0 %v4593_v58  ;;  %3707 = vmatpush1.bf16.msra.mxu1 %v4595_v59  ;;  %v4651_v58 = vcombine.low %v159_v44, %v163_v45  ;;  %v4658_v59 = vcombine.high %v166_v51, %v170_v52  ;;  %v219_v44 = vld [vmem:[#allocation5 + $0x3b8] sm:$0xff]  ;;  %v226_v51 = vld [vmem:[#allocation5 + $0x3f0] sm:$0xff] }
 0x161   :  { %3544 = vmatprep.subr.bf16.mxu0 %v4602_v60  ;;  %3708 = vmatprep.subr.bf16.mxu1 %v4604_v61  ;;  %v4660_v60 = vcombine.high %v167_v53, %v171_v55  ;;  %v174_v61 = vld [vmem:[#allocation5 + $0x250] sm:$0xff]  ;;  %v223_v52 = vld [vmem:[#allocation5 + $0x3d8] sm:$0xff] }
 0x162   :  { %3574 = vmatprep.mubr.bf16.mxu0 %v5628_v57  ;;  %3738 = vmatprep.mubr.bf16.mxu1 %v5628_v57  ;;  %v4628_v57 = vcombine.high %v135_v17, %v139_v18  ;;  %v4665_v9 = vcombine.low %v174_v61, %v178_v62  ;;  %v195_v17 = vld [vmem:[#allocation5 + $0x2f8] sm:$0xff] }
 0x164   :  { %3545 = vmatpush1.bf16.msra.mxu0 %v4601_v2  ;;  %3709 = vmatpush1.bf16.msra.mxu1 %v4603_v3  ;;  %v4659_v2 = vcombine.low %v167_v53, %v171_v55  ;;  %v4666_v3 = vcombine.high %v174_v61, %v178_v62  ;;  %v227_v53 = vld [vmem:[#allocation5 + $0x3f8] sm:$0xff]  ;;  %v234_v61 = vld [vmem:[#allocation5 + $0x430] sm:$0xff] }
 0x165   :  { %3546 = vmatprep.subr.bf16.mxu0 %v4610_v4  ;;  %3710 = vmatprep.subr.bf16.mxu1 %v4612_v5  ;;  %v4668_v4 = vcombine.high %v175_v63, %v179_v0  ;;  %v182_v5 = vld [vmem:[#allocation5 + $0x290] sm:$0xff]  ;;  %v231_v62 = vld [vmem:[#allocation5 + $0x418] sm:$0xff] }
 0x166   :  { %v4673_v18 = vcombine.low %v182_v5, %v186_v6 }
 0x168   :  { %3547 = vmatpush1.bf16.msra.mxu0 %v4609_v10  ;;  %3711 = vmatpush1.bf16.msra.mxu1 %v4611_v11  ;;  %v4667_v10 = vcombine.low %v175_v63, %v179_v0  ;;  %v4674_v11 = vcombine.high %v182_v5, %v186_v6  ;;  %v235_v63 = vld [vmem:[#allocation5 + $0x438] sm:$0xff]  ;;  %v242_v5 = vld [vmem:[#allocation5 + $0x470] sm:$0xff] }
 0x169   :  { %3548 = vmatprep.subr.bf16.mxu0 %v4618_v13  ;;  %3712 = vmatprep.subr.bf16.mxu1 %v4620_v14  ;;  %v4676_v13 = vcombine.high %v183_v7, %v187_v8  ;;  %v190_v14 = vld [vmem:[#allocation5 + $0x2d0] sm:$0xff]  ;;  %v239_v6 = vld [vmem:[#allocation5 + $0x458] sm:$0xff] }
 0x16a   :  { %v4681_v27 = vcombine.low %v190_v14, %v194_v15 }
 0x16c   :  { %3549 = vmatpush1.bf16.msra.mxu0 %v4617_v19  ;;  %3713 = vmatpush1.bf16.msra.mxu1 %v4619_v20  ;;  %v4675_v19 = vcombine.low %v183_v7, %v187_v8  ;;  %v4682_v20 = vcombine.high %v190_v14, %v194_v15  ;;  %v243_v7 = vld [vmem:[#allocation5 + $0x478] sm:$0xff]  ;;  %v250_v14 = vld [vmem:[#allocation5 + $0x4b0] sm:$0xff] }
 0x16d   :  { %3550 = vmatprep.subr.bf16.mxu0 %v4626_v21  ;;  %3714 = vmatprep.subr.bf16.mxu1 %v4628_v57  ;;  %v4684_v21 = vcombine.high %v191_v16, %v195_v17  ;;  %v198_v57 = vld [vmem:[#allocation5 + $0x310] sm:$0xff]  ;;  %v247_v15 = vld [vmem:[#allocation5 + $0x498] sm:$0xff] }
 0x16e   :  { %v4689_v37 = vcombine.low %v198_v57, %v202_v22 }
 0x170   :  { %3551 = vmatpush1.bf16.msra.mxu0 %v4625_v28  ;;  %3715 = vmatpush1.bf16.msra.mxu1 %v4627_v29  ;;  %v4683_v28 = vcombine.low %v191_v16, %v195_v17  ;;  %v4690_v29 = vcombine.high %v198_v57, %v202_v22  ;;  %v251_v16 = vld [vmem:[#allocation5 + $0x4b8] sm:$0xff]  ;;  %v258_v57 = vld [vmem:[#allocation5 + $0x4f0] sm:$0xff] }
 0x171   :  { %3552 = vmatprep.subr.bf16.mxu0 %v4634_v30  ;;  %3716 = vmatprep.subr.bf16.mxu1 %v4636_v31  ;;  %v4692_v30 = vcombine.high %v199_v24, %v203_v26  ;;  %v206_v31 = vld [vmem:[#allocation5 + $0x350] sm:$0xff]  ;;  %v255_v22 = vld [vmem:[#allocation5 + $0x4d8] sm:$0xff] }
 0x172   :  { %v4697_v45 = vcombine.low %v206_v31, %v210_v32 }
 0x174   :  { %3553 = vmatpush1.bf16.msra.mxu0 %v4633_v38  ;;  %3717 = vmatpush1.bf16.msra.mxu1 %v4635_v39  ;;  %v4691_v38 = vcombine.low %v199_v24, %v203_v26  ;;  %v4698_v39 = vcombine.high %v206_v31, %v210_v32  ;;  %v259_v24 = vld [vmem:[#allocation5 + $0x4f8] sm:$0xff] }
 0x175   :  { %3554 = vmatprep.subr.bf16.mxu0 %v4642_v40  ;;  %3718 = vmatprep.subr.bf16.mxu1 %v4644_v41  ;;  %v4700_v40 = vcombine.high %v207_v33, %v211_v35  ;;  %v214_v41 = vld [vmem:[#allocation5 + $0x390] sm:$0xff]  ;;  %v263_v31 = vld [vmem:[#allocation5 + $0x518] sm:$0xff] }
 0x176   :  { %v4705_v55 = vcombine.low %v214_v41, %v218_v42  ;;  %v267_v32 = vld [vmem:[#allocation5 + $0x538] sm:$0xff] }
 0x178   :  { %3555 = vmatpush1.bf16.msra.mxu0 %v4641_v47  ;;  %3719 = vmatpush1.bf16.msra.mxu1 %v4643_v48  ;;  %v4699_v47 = vcombine.low %v207_v33, %v211_v35  ;;  %v4706_v48 = vcombine.high %v214_v41, %v218_v42  ;;  %v4747_v35 = vcombine.low %v255_v22, %v259_v24  ;;  %v275_v41 = vld [vmem:[#allocation5 + $0x578] sm:$0xff] }
 0x179   :  { %3556 = vmatprep.subr.bf16.mxu0 %v4650_v49  ;;  %3720 = vmatprep.subr.bf16.mxu1 %v4652_v50  ;;  %v4708_v49 = vcombine.high %v215_v43, %v219_v44  ;;  %v222_v50 = vld [vmem:[#allocation5 + $0x3d0] sm:$0xff] }
 0x17a   :  { %v4713_v0 = vcombine.low %v222_v50, %v226_v51 }
 0x17c   :  { %3557 = vmatpush1.bf16.msra.mxu0 %v4649_v56  ;;  %3721 = vmatpush1.bf16.msra.mxu1 %v4651_v58  ;;  %v4707_v56 = vcombine.low %v215_v43, %v219_v44  ;;  %v4714_v58 = vcombine.high %v222_v50, %v226_v51  ;;  %v4755_v43 = vcombine.low %v263_v31, %v267_v32  ;;  %v283_v50 = vld [vmem:[#allocation5 + $0x5b8] sm:$0xff] }
 0x17d   :  { %3558 = vmatprep.subr.bf16.mxu0 %v4658_v59  ;;  %3722 = vmatprep.subr.bf16.mxu1 %v4660_v60  ;;  %v4716_v59 = vcombine.high %v223_v52, %v227_v53  ;;  %v230_v60 = vld [vmem:[#allocation5 + $0x410] sm:$0xff] }
 0x17e   :  { %v4721_v8 = vcombine.low %v230_v60, %v234_v61 }
 0x180   :  { %3559 = vmatpush1.bf16.msra.mxu0 %v4657_v1  ;;  %3723 = vmatpush1.bf16.msra.mxu1 %v4659_v2  ;;  %v4715_v1 = vcombine.low %v223_v52, %v227_v53  ;;  %v4722_v2 = vcombine.high %v230_v60, %v234_v61  ;;  %v291_v60 = vld [vmem:[#allocation5 + $0x5f8] sm:$0xff] }
 0x181   :  { %3560 = vmatprep.subr.bf16.mxu0 %v4666_v3  ;;  %3724 = vmatprep.subr.bf16.mxu1 %v4668_v4  ;;  %v4724_v3 = vcombine.high %v231_v62, %v235_v63  ;;  %v238_v4 = vld [vmem:[#allocation5 + $0x450] sm:$0xff] }
 0x182   :  { %v4729_v17 = vcombine.low %v238_v4, %v242_v5 }
 0x184   :  { %3561 = vmatpush1.bf16.msra.mxu0 %v4665_v9  ;;  %3725 = vmatpush1.bf16.msra.mxu1 %v4667_v10  ;;  %v4723_v9 = vcombine.low %v231_v62, %v235_v63  ;;  %v4730_v10 = vcombine.high %v238_v4, %v242_v5  ;;  %v299_v4 = vld [vmem:[#allocation5 + $0x638] sm:$0xff] }
 0x185   :  { %3562 = vmatprep.subr.bf16.mxu0 %v4674_v11  ;;  %3726 = vmatprep.subr.bf16.mxu1 %v4676_v13  ;;  %v4732_v11 = vcombine.high %v239_v6, %v243_v7  ;;  %v246_v13 = vld [vmem:[#allocation5 + $0x490] sm:$0xff] }
 0x186   :  { %v4737_v26 = vcombine.low %v246_v13, %v250_v14 }
 0x188   :  { %3563 = vmatpush1.bf16.msra.mxu0 %v4673_v18  ;;  %3727 = vmatpush1.bf16.msra.mxu1 %v4675_v19  ;;  %v4731_v18 = vcombine.low %v239_v6, %v243_v7  ;;  %v4738_v19 = vcombine.high %v246_v13, %v250_v14  ;;  %v307_v13 = vld [vmem:[#allocation5 + $0x678] sm:$0xff] }
 0x189   :  { %3564 = vmatprep.subr.bf16.mxu0 %v4682_v20  ;;  %3728 = vmatprep.subr.bf16.mxu1 %v4684_v21  ;;  %v4740_v20 = vcombine.high %v247_v15, %v251_v16  ;;  %v254_v21 = vld [vmem:[#allocation5 + $0x4d0] sm:$0xff] }
 0x18a   :  { %v4745_v33 = vcombine.low %v254_v21, %v258_v57 }
 0x18c   :  { %3565 = vmatpush1.bf16.msra.mxu0 %v4681_v27  ;;  %3729 = vmatpush1.bf16.msra.mxu1 %v4683_v28  ;;  %v4746_v27 = vcombine.high %v254_v21, %v258_v57  ;;  %v4748_v28 = vcombine.high %v255_v22, %v259_v24  ;;  %v315_v21 = vld [vmem:[#allocation5 + $0x6b8] sm:$0xff] }
 0x18d   :  { %3566 = vmatprep.subr.bf16.mxu0 %v4690_v29  ;;  %3730 = vmatprep.subr.bf16.mxu1 %v4692_v30  ;;  %v262_v29 = vld [vmem:[#allocation5 + $0x510] sm:$0xff] }
 0x18e   :  { %v266_v30 = vld [vmem:[#allocation5 + $0x530] sm:$0xff] }
 0x18f   :  { %v4753_v42 = vcombine.low %v262_v29, %v266_v30 }
 0x190   :  { %3567 = vmatpush1.bf16.msra.mxu0 %v4689_v37  ;;  %3731 = vmatpush1.bf16.msra.mxu1 %v4691_v38  ;;  %v4754_v37 = vcombine.high %v262_v29, %v266_v30  ;;  %v270_v38 = vld [vmem:[#allocation5 + $0x550] sm:$0xff]  ;;  %v323_v29 = vld [vmem:[#allocation5 + $0x6f8] sm:$0xff] }
 0x191   :  { %3568 = vmatprep.subr.bf16.mxu0 %v4698_v39  ;;  %3732 = vmatprep.subr.bf16.mxu1 %v4700_v40  ;;  %v274_v39 = vld [vmem:[#allocation5 + $0x570] sm:$0xff]  ;;  %v271_v40 = vld [vmem:[#allocation5 + $0x558] sm:$0xff] }
 0x192   :  { %v4762_v44 = vcombine.high %v270_v38, %v274_v39  ;;  %v4761_v51 = vcombine.low %v270_v38, %v274_v39  ;;  %v4763_v52 = vcombine.low %v271_v40, %v275_v41  ;;  %v331_v38 = vld [vmem:[#allocation5 + $0x738] sm:$0xff] }
 0x194   :  { %3569 = vmatpush1.bf16.msra.mxu0 %v4697_v45  ;;  %3733 = vmatpush1.bf16.msra.mxu1 %v4699_v47  ;;  %v4764_v45 = vcombine.high %v271_v40, %v275_v41  ;;  %v278_v47 = vld [vmem:[#allocation5 + $0x590] sm:$0xff] }
 0x195   :  { %3570 = vmatprep.subr.bf16.mxu0 %v4706_v48  ;;  %3734 = vmatprep.subr.bf16.mxu1 %v4708_v49  ;;  %v282_v48 = vld [vmem:[#allocation5 + $0x5b0] sm:$0xff]  ;;  %v279_v49 = vld [vmem:[#allocation5 + $0x598] sm:$0xff] }
 0x196   :  { %v4770_v53 = vcombine.high %v278_v47, %v282_v48  ;;  %v4769_v61 = vcombine.low %v278_v47, %v282_v48  ;;  %v4771_v62 = vcombine.low %v279_v49, %v283_v50  ;;  %v339_v47 = vld [vmem:[#allocation5 + $0x778] sm:$0xff] }
 0x198   :  { %3571 = vmatpush1.bf16.msra.mxu0 %v4705_v55  ;;  %3735 = vmatpush1.bf16.msra.mxu1 %v4707_v56  ;;  %v4772_v55 = vcombine.high %v279_v49, %v283_v50  ;;  %v286_v56 = vld [vmem:[#allocation5 + $0x5d0] sm:$0xff] }
 0x199   :  { %3572 = vmatprep.subr.bf16.mxu0 %v4714_v58  ;;  %3736 = vmatprep.subr.bf16.mxu1 %v4716_v59  ;;  %v290_v58 = vld [vmem:[#allocation5 + $0x5f0] sm:$0xff]  ;;  %v287_v59 = vld [vmem:[#allocation5 + $0x5d8] sm:$0xff] }
 0x19a   :  { %v4778_v63 = vcombine.high %v286_v56, %v290_v58  ;;  %v4777_v5 = vcombine.low %v286_v56, %v290_v58  ;;  %v4779_v6 = vcombine.low %v287_v59, %v291_v60  ;;  %v347_v56 = vld [vmem:[#allocation5 + $0x7b8] sm:$0xff] }
 0x19c   :  { %3573 = vmatpush1.bf16.msra.mxu0 %v4713_v0  ;;  %3737 = vmatpush1.bf16.msra.mxu1 %v4715_v1  ;;  %v4780_v0 = vcombine.high %v287_v59, %v291_v60  ;;  %v294_v1 = vld [vmem:[#allocation5 + $0x610] sm:$0xff] }
 0x19d   :  { %3583 = vmatprep.subr.bf16.mxu0 %v4722_v2  ;;  %3747 = vmatprep.subr.bf16.mxu1 %v4724_v3  ;;  %v298_v2 = vld [vmem:[#allocation5 + $0x630] sm:$0xff]  ;;  %v295_v3 = vld [vmem:[#allocation5 + $0x618] sm:$0xff] }
 0x19e   :  { %v4786_v7 = vcombine.high %v294_v1, %v298_v2  ;;  %v4785_v14 = vcombine.low %v294_v1, %v298_v2  ;;  %v355_v1 = vld [vmem:[#allocation5 + $0x7f8] sm:$0xff] }
 0x19f   :  { %3575 = vmatmul.mubr.bf16.vlgmr.msra.gmra.mrb[4].mxu0 %v5632_v12  ;;  %3739 = vmatmul.mubr.bf16.vlgmr.msra.gmra.mrb[4].mxu1 %v5632_v12  ;;  %v4739_v12 = vcombine.low %v247_v15, %v251_v16  ;;  %v4787_v15 = vcombine.low %v295_v3, %v299_v4 }
 0x1a0   :  { %3584 = vmatpush1.bf16.msra.mxu0 %v4721_v8  ;;  %3748 = vmatpush1.bf16.msra.mxu1 %v4723_v9  ;;  %v4788_v8 = vcombine.high %v295_v3, %v299_v4  ;;  %v302_v9 = vld [vmem:[#allocation5 + $0x650] sm:$0xff] }
 0x1a1   :  { %3585 = vmatprep.subr.bf16.mxu0 %v4730_v10  ;;  %3749 = vmatprep.subr.bf16.mxu1 %v4732_v11  ;;  %v306_v10 = vld [vmem:[#allocation5 + $0x670] sm:$0xff]  ;;  %v303_v11 = vld [vmem:[#allocation5 + $0x658] sm:$0xff] }
 0x1a2   :  { %3615 = vmatprep.mubr.bf16.mxu0 %v5634_v23  ;;  %3779 = vmatprep.mubr.bf16.mxu1 %v5634_v23  ;;  %v4756_v23 = vcombine.high %v263_v31, %v267_v32  ;;  %v4794_v16 = vcombine.high %v302_v9, %v306_v10  ;;  %v4793_v57 = vcombine.low %v302_v9, %v306_v10  ;;  %v363_v9 = vld [vmem:[#allocation5 + $0x838] sm:$0xff] }
 0x1a3   :  { %v4795_v22 = vcombine.low %v303_v11, %v307_v13 }
 0x1a4   :  { %3586 = vmatpush1.bf16.msra.mxu0 %v4729_v17  ;;  %3750 = vmatpush1.bf16.msra.mxu1 %v4731_v18  ;;  %v4796_v17 = vcombine.high %v303_v11, %v307_v13  ;;  %v310_v18 = vld [vmem:[#allocation5 + $0x690] sm:$0xff] }
 0x1a5   :  { %3587 = vmatprep.subr.bf16.mxu0 %v4738_v19  ;;  %3751 = vmatprep.subr.bf16.mxu1 %v4740_v20  ;;  %v314_v19 = vld [vmem:[#allocation5 + $0x6b0] sm:$0xff]  ;;  %v311_v20 = vld [vmem:[#allocation5 + $0x698] sm:$0xff] }
 0x1a6   :  { %v4802_v24 = vcombine.high %v310_v18, %v314_v19  ;;  %v4801_v30 = vcombine.low %v310_v18, %v314_v19  ;;  %v4803_v31 = vcombine.low %v311_v20, %v315_v21  ;;  %v371_v18 = vld [vmem:[#allocation5 + $0x878] sm:$0xff] }
 0x1a8   :  { %3588 = vmatpush1.bf16.msra.mxu0 %v4737_v26  ;;  %3752 = vmatpush1.bf16.msra.mxu1 %v4739_v12  ;;  %v4804_v26 = vcombine.high %v311_v20, %v315_v21  ;;  %v318_v12 = vld [vmem:[#allocation5 + $0x6d0] sm:$0xff] }
 0x1a9   :  { %3589 = vmatprep.subr.bf16.mxu0 %v4746_v27  ;;  %3753 = vmatprep.subr.bf16.mxu1 %v4748_v28  ;;  %v322_v27 = vld [vmem:[#allocation5 + $0x6f0] sm:$0xff]  ;;  %v319_v28 = vld [vmem:[#allocation5 + $0x6d8] sm:$0xff] }
 0x1aa   :  { %v4810_v32 = vcombine.high %v318_v12, %v322_v27  ;;  %v4809_v39 = vcombine.low %v318_v12, %v322_v27  ;;  %v4811_v40 = vcombine.low %v319_v28, %v323_v29  ;;  %v379_v12 = vld [vmem:[#allocation5 + $0x8b8] sm:$0xff] }
 0x1ac   :  { %3590 = vmatpush1.bf16.msra.mxu0 %v4745_v33  ;;  %3754 = vmatpush1.bf16.msra.mxu1 %v4747_v35  ;;  %v4812_v33 = vcombine.high %v319_v28, %v323_v29  ;;  %v326_v35 = vld [vmem:[#allocation5 + $0x710] sm:$0xff] }
 0x1ad   :  { %3591 = vmatprep.subr.bf16.mxu0 %v4754_v37  ;;  %3755 = vmatprep.subr.bf16.mxu1 %v4756_v23  ;;  %v330_v37 = vld [vmem:[#allocation5 + $0x730] sm:$0xff]  ;;  %v327_v23 = vld [vmem:[#allocation5 + $0x718] sm:$0xff] }
 0x1ae   :  { %v4818_v41 = vcombine.high %v326_v35, %v330_v37  ;;  %v4817_v48 = vcombine.low %v326_v35, %v330_v37  ;;  %v4819_v49 = vcombine.low %v327_v23, %v331_v38  ;;  %v387_v35 = vld [vmem:[#allocation5 + $0x8f8] sm:$0xff] }
 0x1b0   :  { %3592 = vmatpush1.bf16.msra.mxu0 %v4753_v42  ;;  %3756 = vmatpush1.bf16.msra.mxu1 %v4755_v43  ;;  %v4820_v42 = vcombine.high %v327_v23, %v331_v38  ;;  %v334_v43 = vld [vmem:[#allocation5 + $0x750] sm:$0xff] }
 0x1b1   :  { %3593 = vmatprep.subr.bf16.mxu0 %v4762_v44  ;;  %3757 = vmatprep.subr.bf16.mxu1 %v4764_v45  ;;  %v338_v44 = vld [vmem:[#allocation5 + $0x770] sm:$0xff]  ;;  %v335_v45 = vld [vmem:[#allocation5 + $0x758] sm:$0xff] }
 0x1b2   :  { %v4826_v50 = vcombine.high %v334_v43, %v338_v44  ;;  %v4825_v58 = vcombine.low %v334_v43, %v338_v44  ;;  %v4827_v59 = vcombine.low %v335_v45, %v339_v47 }
 0x1b4   :  { %3594 = vmatpush1.bf16.msra.mxu0 %v4761_v51  ;;  %3758 = vmatpush1.bf16.msra.mxu1 %v4763_v52  ;;  %v4828_v51 = vcombine.high %v335_v45, %v339_v47  ;;  %v342_v52 = vld [vmem:[#allocation5 + $0x790] sm:$0xff] }
 0x1b5   :  { %3595 = vmatprep.subr.bf16.mxu0 %v4770_v53  ;;  %3759 = vmatprep.subr.bf16.mxu1 %v4772_v55  ;;  %v346_v53 = vld [vmem:[#allocation5 + $0x7b0] sm:$0xff]  ;;  %v343_v55 = vld [vmem:[#allocation5 + $0x798] sm:$0xff] }
 0x1b6   :  { %v4834_v60 = vcombine.high %v342_v52, %v346_v53  ;;  %v4833_v2 = vcombine.low %v342_v52, %v346_v53  ;;  %v4835_v3 = vcombine.low %v343_v55, %v347_v56  ;;  %v398_v47 = vld [vmem:[#allocation5 + $0x950] sm:$0xff] }
 0x1b8   :  { %3596 = vmatpush1.bf16.msra.mxu0 %v4769_v61  ;;  %3760 = vmatpush1.bf16.msra.mxu1 %v4771_v62  ;;  %v4836_v61 = vcombine.high %v343_v55, %v347_v56  ;;  %v350_v62 = vld [vmem:[#allocation5 + $0x7d0] sm:$0xff] }
 0x1b9   :  { %3597 = vmatprep.subr.bf16.mxu0 %v4778_v63  ;;  %3761 = vmatprep.subr.bf16.mxu1 %v4780_v0  ;;  %v354_v63 = vld [vmem:[#allocation5 + $0x7f0] sm:$0xff]  ;;  %v351_v0 = vld [vmem:[#allocation5 + $0x7d8] sm:$0xff] }
 0x1ba   :  { %v4842_v4 = vcombine.high %v350_v62, %v354_v63  ;;  %v4841_v10 = vcombine.low %v350_v62, %v354_v63  ;;  %v4843_v11 = vcombine.low %v351_v0, %v355_v1  ;;  %v406_v56 = vld [vmem:[#allocation5 + $0x990] sm:$0xff] }
 0x1bc   :  { %3598 = vmatpush1.bf16.msra.mxu0 %v4777_v5  ;;  %3762 = vmatpush1.bf16.msra.mxu1 %v4779_v6  ;;  %v4844_v5 = vcombine.high %v351_v0, %v355_v1  ;;  %v358_v6 = vld [vmem:[#allocation5 + $0x810] sm:$0xff] }
 0x1bd   :  { %3599 = vmatprep.subr.bf16.mxu0 %v4786_v7  ;;  %3763 = vmatprep.subr.bf16.mxu1 %v4788_v8  ;;  %v362_v7 = vld [vmem:[#allocation5 + $0x830] sm:$0xff]  ;;  %v359_v8 = vld [vmem:[#allocation5 + $0x818] sm:$0xff] }
 0x1be   :  { %v4850_v13 = vcombine.high %v358_v6, %v362_v7  ;;  %v4849_v19 = vcombine.low %v358_v6, %v362_v7  ;;  %v4851_v20 = vcombine.low %v359_v8, %v363_v9  ;;  %v414_v1 = vld [vmem:[#allocation5 + $0x9d0] sm:$0xff] }
 0x1c0   :  { %3600 = vmatpush1.bf16.msra.mxu0 %v4785_v14  ;;  %3764 = vmatpush1.bf16.msra.mxu1 %v4787_v15  ;;  %v4852_v14 = vcombine.high %v359_v8, %v363_v9  ;;  %v366_v15 = vld [vmem:[#allocation5 + $0x850] sm:$0xff] }
 0x1c1   :  { %3601 = vmatprep.subr.bf16.mxu0 %v4794_v16  ;;  %3765 = vmatprep.subr.bf16.mxu1 %v4796_v17  ;;  %v370_v16 = vld [vmem:[#allocation5 + $0x870] sm:$0xff]  ;;  %v367_v17 = vld [vmem:[#allocation5 + $0x858] sm:$0xff] }
 0x1c2   :  { %v4858_v21 = vcombine.high %v366_v15, %v370_v16  ;;  %v4857_v27 = vcombine.low %v366_v15, %v370_v16  ;;  %v4859_v28 = vcombine.low %v367_v17, %v371_v18  ;;  %v422_v9 = vld [vmem:[#allocation5 + $0xa10] sm:$0xff] }
 0x1c4   :  { %3602 = vmatpush1.bf16.msra.mxu0 %v4793_v57  ;;  %3766 = vmatpush1.bf16.msra.mxu1 %v4795_v22  ;;  %v4860_v57 = vcombine.high %v367_v17, %v371_v18  ;;  %v374_v22 = vld [vmem:[#allocation5 + $0x890] sm:$0xff] }
 0x1c5   :  { %3603 = vmatprep.subr.bf16.mxu0 %v4802_v24  ;;  %3767 = vmatprep.subr.bf16.mxu1 %v4804_v26  ;;  %v378_v24 = vld [vmem:[#allocation5 + $0x8b0] sm:$0xff]  ;;  %v375_v26 = vld [vmem:[#allocation5 + $0x898] sm:$0xff] }
 0x1c6   :  { %v4866_v29 = vcombine.high %v374_v22, %v378_v24  ;;  %v4865_v37 = vcombine.low %v374_v22, %v378_v24  ;;  %v430_v18 = vld [vmem:[#allocation5 + $0xa50] sm:$0xff] }
 0x1c8   :  { %3604 = vmatpush1.bf16.msra.mxu0 %v4801_v30  ;;  %3768 = vmatpush1.bf16.msra.mxu1 %v4803_v31  ;;  %v4868_v30 = vcombine.high %v375_v26, %v379_v12  ;;  %v382_v31 = vld [vmem:[#allocation5 + $0x8d0] sm:$0xff] }
 0x1c9   :  { %3605 = vmatprep.subr.bf16.mxu0 %v4810_v32  ;;  %3769 = vmatprep.subr.bf16.mxu1 %v4812_v33  ;;  %v386_v32 = vld [vmem:[#allocation5 + $0x8f0] sm:$0xff]  ;;  %v383_v33 = vld [vmem:[#allocation5 + $0x8d8] sm:$0xff] }
 0x1ca   :  { %v4874_v23 = vcombine.high %v382_v31, %v386_v32  ;;  %v4876_v38 = vcombine.high %v383_v33, %v387_v35  ;;  %v4873_v43 = vcombine.low %v382_v31, %v386_v32  ;;  %v4875_v44 = vcombine.low %v383_v33, %v387_v35  ;;  %v446_v35 = vld [vmem:[#allocation5 + $0xad0] sm:$0xff] }
 0x1cc   :  { %3606 = vmatpush1.bf16.msra.mxu0 %v4809_v39  ;;  %3770 = vmatpush1.bf16.msra.mxu1 %v4811_v40  ;;  %v390_v39 = vld [vmem:[#allocation5 + $0x910] sm:$0xff] }
 0x1cd   :  { %3607 = vmatprep.subr.bf16.mxu0 %v4818_v41  ;;  %3771 = vmatprep.subr.bf16.mxu1 %v4820_v42  ;;  %v394_v40 = vld [vmem:[#allocation5 + $0x930] sm:$0xff]  ;;  %v391_v41 = vld [vmem:[#allocation5 + $0x918] sm:$0xff] }
 0x1ce   :  { %v395_v42 = vld [vmem:[#allocation5 + $0x938] sm:$0xff]  ;;  %v4882_v45 = vcombine.high %v390_v39, %v394_v40 }
 0x1cf   :  { %v4883_v52 = vcombine.low %v391_v41, %v395_v42 }
 0x1d0   :  { %3608 = vmatpush1.bf16.msra.mxu0 %v4817_v48  ;;  %3772 = vmatpush1.bf16.msra.mxu1 %v4819_v49  ;;  %v402_v48 = vld [vmem:[#allocation5 + $0x970] sm:$0xff]  ;;  %v399_v49 = vld [vmem:[#allocation5 + $0x958] sm:$0xff] }
 0x1d1   :  { %3609 = vmatprep.subr.bf16.mxu0 %v4826_v50  ;;  %3773 = vmatprep.subr.bf16.mxu1 %v4828_v51  ;;  %v403_v50 = vld [vmem:[#allocation5 + $0x978] sm:$0xff]  ;;  %v4881_v51 = vcombine.low %v390_v39, %v394_v40  ;;  %v4890_v53 = vcombine.high %v398_v47, %v402_v48 }
 0x1d2   :  { %v4892_v55 = vcombine.high %v399_v49, %v403_v50  ;;  %v4891_v62 = vcombine.low %v399_v49, %v403_v50  ;;  %v462_v50 = vld [vmem:[#allocation5 + $0xb50] sm:$0xff] }
 0x1d4   :  { %3610 = vmatpush1.bf16.msra.mxu0 %v4825_v58  ;;  %3774 = vmatpush1.bf16.msra.mxu1 %v4827_v59  ;;  %v410_v58 = vld [vmem:[#allocation5 + $0x9b0] sm:$0xff]  ;;  %v407_v59 = vld [vmem:[#allocation5 + $0x998] sm:$0xff] }
 0x1d5   :  { %3611 = vmatprep.subr.bf16.mxu0 %v4834_v60  ;;  %3775 = vmatprep.subr.bf16.mxu1 %v4836_v61  ;;  %v411_v60 = vld [vmem:[#allocation5 + $0x9b8] sm:$0xff]  ;;  %v4889_v61 = vcombine.low %v398_v47, %v402_v48  ;;  %v4898_v63 = vcombine.high %v406_v56, %v410_v58 }
 0x1d6   :  { %v4900_v0 = vcombine.high %v407_v59, %v411_v60  ;;  %v4899_v6 = vcombine.low %v407_v59, %v411_v60  ;;  %v470_v60 = vld [vmem:[#allocation5 + $0xb90] sm:$0xff] }
 0x1d8   :  { %3612 = vmatpush1.bf16.msra.mxu0 %v4833_v2  ;;  %3776 = vmatpush1.bf16.msra.mxu1 %v4835_v3  ;;  %v418_v2 = vld [vmem:[#allocation5 + $0x9f0] sm:$0xff]  ;;  %v415_v3 = vld [vmem:[#allocation5 + $0x9d8] sm:$0xff] }
 0x1d9   :  { %3613 = vmatprep.subr.bf16.mxu0 %v4842_v4  ;;  %3777 = vmatprep.subr.bf16.mxu1 %v4844_v5  ;;  %v419_v4 = vld [vmem:[#allocation5 + $0x9f8] sm:$0xff]  ;;  %v4897_v5 = vcombine.low %v406_v56, %v410_v58  ;;  %v4906_v7 = vcombine.high %v414_v1, %v418_v2 }
 0x1da   :  { %v4908_v8 = vcombine.high %v415_v3, %v419_v4  ;;  %v4907_v15 = vcombine.low %v415_v3, %v419_v4  ;;  %v478_v4 = vld [vmem:[#allocation5 + $0xbd0] sm:$0xff] }
 0x1dc   :  { %3614 = vmatpush1.bf16.msra.mxu0 %v4841_v10  ;;  %3778 = vmatpush1.bf16.msra.mxu1 %v4843_v11  ;;  %v426_v10 = vld [vmem:[#allocation5 + $0xa30] sm:$0xff]  ;;  %v423_v11 = vld [vmem:[#allocation5 + $0xa18] sm:$0xff] }
 0x1dd   :  { %3624 = vmatprep.subr.bf16.mxu0 %v4850_v13  ;;  %3788 = vmatprep.subr.bf16.mxu1 %v4852_v14  ;;  %v427_v13 = vld [vmem:[#allocation5 + $0xa38] sm:$0xff]  ;;  %v4905_v14 = vcombine.low %v414_v1, %v418_v2  ;;  %v4914_v16 = vcombine.high %v422_v9, %v426_v10 }
 0x1de   :  { %v4916_v17 = vcombine.high %v423_v11, %v427_v13  ;;  %v4915_v22 = vcombine.low %v423_v11, %v427_v13  ;;  %v486_v13 = vld [vmem:[#allocation5 + $0xc10] sm:$0xff] }
 0x1df   :  { %3616 = vmatmul.mubr.bf16.vlgmr.msra.gmra.mrb[4].mxu0 %v5640_v25  ;;  %3780 = vmatmul.mubr.bf16.vlgmr.msra.gmra.mrb[4].mxu1 %v5640_v25  ;;  %v4867_v25 = vcombine.low %v375_v26, %v379_v12  ;;  %v438_v12 = vld [vmem:[#allocation5 + $0xa90] sm:$0xff] }
 0x1e0   :  { %3625 = vmatpush1.bf16.msra.mxu0 %v4849_v19  ;;  %3789 = vmatpush1.bf16.msra.mxu1 %v4851_v20  ;;  %v434_v19 = vld [vmem:[#allocation5 + $0xa70] sm:$0xff]  ;;  %v431_v20 = vld [vmem:[#allocation5 + $0xa58] sm:$0xff] }
 0x1e1   :  { %3626 = vmatprep.subr.bf16.mxu0 %v4858_v21  ;;  %3790 = vmatprep.subr.bf16.mxu1 %v4860_v57  ;;  %v435_v21 = vld [vmem:[#allocation5 + $0xa78] sm:$0xff]  ;;  %v4913_v57 = vcombine.low %v422_v9, %v426_v10  ;;  %v4922_v24 = vcombine.high %v430_v18, %v434_v19 }
 0x1e2   :  { %3656 = vmatprep.mubr.bf16.mxu0 %v5642_v34  ;;  %3820 = vmatprep.mubr.bf16.mxu1 %v5642_v34  ;;  %v4884_v34 = vcombine.high %v391_v41, %v395_v42  ;;  %v4924_v26 = vcombine.high %v431_v20, %v435_v21  ;;  %v4923_v31 = vcombine.low %v431_v20, %v435_v21  ;;  %v454_v42 = vld [vmem:[#allocation5 + $0xb10] sm:$0xff] }
 0x1e3   :  { %v494_v21 = vld [vmem:[#allocation5 + $0xc50] sm:$0xff] }
 0x1e4   :  { %3627 = vmatpush1.bf16.msra.mxu0 %v4857_v27  ;;  %3791 = vmatpush1.bf16.msra.mxu1 %v4859_v28  ;;  %v442_v27 = vld [vmem:[#allocation5 + $0xab0] sm:$0xff]  ;;  %v439_v28 = vld [vmem:[#allocation5 + $0xa98] sm:$0xff] }
 0x1e5   :  { %3628 = vmatprep.subr.bf16.mxu0 %v4866_v29  ;;  %3792 = vmatprep.subr.bf16.mxu1 %v4868_v30  ;;  %v443_v29 = vld [vmem:[#allocation5 + $0xab8] sm:$0xff]  ;;  %v4921_v30 = vcombine.low %v430_v18, %v434_v19  ;;  %v4930_v32 = vcombine.high %v438_v12, %v442_v27 }
 0x1e6   :  { %v4932_v33 = vcombine.high %v439_v28, %v443_v29  ;;  %v4931_v39 = vcombine.low %v439_v28, %v443_v29  ;;  %v502_v29 = vld [vmem:[#allocation5 + $0xc90] sm:$0xff] }
 0x1e8   :  { %3629 = vmatpush1.bf16.msra.mxu0 %v4865_v37  ;;  %3793 = vmatpush1.bf16.msra.mxu1 %v4867_v25  ;;  %v450_v37 = vld [vmem:[#allocation5 + $0xaf0] sm:$0xff]  ;;  %v447_v25 = vld [vmem:[#allocation5 + $0xad8] sm:$0xff] }
 0x1e9   :  { %3630 = vmatprep.subr.bf16.mxu0 %v4874_v23  ;;  %3794 = vmatprep.subr.bf16.mxu1 %v4876_v38  ;;  %v451_v23 = vld [vmem:[#allocation5 + $0xaf8] sm:$0xff]  ;;  %v4929_v38 = vcombine.low %v438_v12, %v442_v27  ;;  %v4938_v40 = vcombine.high %v446_v35, %v450_v37 }
 0x1ea   :  { %v4940_v41 = vcombine.high %v447_v25, %v451_v23  ;;  %v4939_v47 = vcombine.low %v447_v25, %v451_v23  ;;  %v510_v23 = vld [vmem:[#allocation5 + $0xcd0] sm:$0xff] }
 0x1ec   :  { %3631 = vmatpush1.bf16.msra.mxu0 %v4873_v43  ;;  %3795 = vmatpush1.bf16.msra.mxu1 %v4875_v44  ;;  %v458_v43 = vld [vmem:[#allocation5 + $0xb30] sm:$0xff]  ;;  %v455_v44 = vld [vmem:[#allocation5 + $0xb18] sm:$0xff] }
 0x1ed   :  { %3632 = vmatprep.subr.bf16.mxu0 %v4882_v45  ;;  %3796 = vmatprep.subr.bf16.mxu1 %v4884_v34  ;;  %v459_v45 = vld [vmem:[#allocation5 + $0xb38] sm:$0xff]  ;;  %v4937_v34 = vcombine.low %v446_v35, %v450_v37  ;;  %v4946_v48 = vcombine.high %v454_v42, %v458_v43 }
 0x1ee   :  { %v4948_v49 = vcombine.high %v455_v44, %v459_v45  ;;  %v4947_v56 = vcombine.low %v455_v44, %v459_v45  ;;  %v518_v44 = vld [vmem:[#allocation5 + $0xd10] sm:$0xff] }
 0x1ef   :  { %v522_v45 = vld [vmem:[#allocation5 + $0xd30] sm:$0xff] }
 0x1f0   :  { %3633 = vmatpush1.bf16.msra.mxu0 %v4881_v51  ;;  %3797 = vmatpush1.bf16.msra.mxu1 %v4883_v52  ;;  %v466_v51 = vld [vmem:[#allocation5 + $0xb70] sm:$0xff]  ;;  %v463_v52 = vld [vmem:[#allocation5 + $0xb58] sm:$0xff] }
 0x1f1   :  { %3634 = vmatprep.subr.bf16.mxu0 %v4890_v53  ;;  %3798 = vmatprep.subr.bf16.mxu1 %v4892_v55  ;;  %v467_v53 = vld [vmem:[#allocation5 + $0xb78] sm:$0xff]  ;;  %v4945_v55 = vcombine.low %v454_v42, %v458_v43  ;;  %v4954_v58 = vcombine.high %v462_v50, %v466_v51 }
 0x1f2   :  { %v4956_v59 = vcombine.high %v463_v52, %v467_v53  ;;  %v4955_v1 = vcombine.low %v463_v52, %v467_v53  ;;  %v530_v52 = vld [vmem:[#allocation5 + $0xd70] sm:$0xff]  ;;  %v527_v53 = vld [vmem:[#allocation5 + $0xd58] sm:$0xff] }
 0x1f4   :  { %3635 = vmatpush1.bf16.msra.mxu0 %v4889_v61  ;;  %3799 = vmatpush1.bf16.msra.mxu1 %v4891_v62  ;;  %v474_v61 = vld [vmem:[#allocation5 + $0xbb0] sm:$0xff]  ;;  %v471_v62 = vld [vmem:[#allocation5 + $0xb98] sm:$0xff] }
 0x1f5   :  { %3636 = vmatprep.subr.bf16.mxu0 %v4898_v63  ;;  %3800 = vmatprep.subr.bf16.mxu1 %v4900_v0  ;;  %v475_v63 = vld [vmem:[#allocation5 + $0xbb8] sm:$0xff]  ;;  %v4953_v0 = vcombine.low %v462_v50, %v466_v51  ;;  %v4962_v2 = vcombine.high %v470_v60, %v474_v61  ;;  %v5010_v50 = vcombine.high %v518_v44, %v522_v45  ;;  %v526_v51 = vld [vmem:[#allocation5 + $0xd50] sm:$0xff] }
 0x1f6   :  { %v4964_v3 = vcombine.high %v471_v62, %v475_v63  ;;  %v4963_v9 = vcombine.low %v471_v62, %v475_v63  ;;  %v538_v62 = vld [vmem:[#allocation5 + $0xdb0] sm:$0xff]  ;;  %v535_v63 = vld [vmem:[#allocation5 + $0xd98] sm:$0xff] }
 0x1f8   :  { %3637 = vmatpush1.bf16.msra.mxu0 %v4897_v5  ;;  %3801 = vmatpush1.bf16.msra.mxu1 %v4899_v6  ;;  %v482_v5 = vld [vmem:[#allocation5 + $0xbf0] sm:$0xff]  ;;  %v479_v6 = vld [vmem:[#allocation5 + $0xbd8] sm:$0xff] }
 0x1f9   :  { %3638 = vmatprep.subr.bf16.mxu0 %v4906_v7  ;;  %3802 = vmatprep.subr.bf16.mxu1 %v4908_v8  ;;  %v483_v7 = vld [vmem:[#allocation5 + $0xbf8] sm:$0xff]  ;;  %v4961_v8 = vcombine.low %v470_v60, %v474_v61  ;;  %v4970_v10 = vcombine.high %v478_v4, %v482_v5  ;;  %v534_v61 = vld [vmem:[#allocation5 + $0xd90] sm:$0xff] }
 0x1fa   :  { %v4972_v11 = vcombine.high %v479_v6, %v483_v7  ;;  %v4971_v18 = vcombine.low %v479_v6, %v483_v7  ;;  %v542_v6 = vld [vmem:[#allocation5 + $0xdd0] sm:$0xff] }
 0x1fb   :  { %v546_v7 = vld [vmem:[#allocation5 + $0xdf0] sm:$0xff] }
 0x1fc   :  { %3639 = vmatpush1.bf16.msra.mxu0 %v4905_v14  ;;  %3803 = vmatpush1.bf16.msra.mxu1 %v4907_v15  ;;  %v490_v14 = vld [vmem:[#allocation5 + $0xc30] sm:$0xff]  ;;  %v487_v15 = vld [vmem:[#allocation5 + $0xc18] sm:$0xff] }
 0x1fd   :  { %3640 = vmatprep.subr.bf16.mxu0 %v4914_v16  ;;  %3804 = vmatprep.subr.bf16.mxu1 %v4916_v17  ;;  %v491_v16 = vld [vmem:[#allocation5 + $0xc38] sm:$0xff]  ;;  %v4969_v17 = vcombine.low %v478_v4, %v482_v5  ;;  %v4978_v19 = vcombine.high %v486_v13, %v490_v14 }
 0x1fe   :  { %v4980_v20 = vcombine.high %v487_v15, %v491_v16  ;;  %v4979_v12 = vcombine.low %v487_v15, %v491_v16  ;;  %v5025_v15 = vcombine.low %v534_v61, %v538_v62 }
 0x200   :  { %3641 = vmatpush1.bf16.msra.mxu0 %v4913_v57  ;;  %3805 = vmatpush1.bf16.msra.mxu1 %v4915_v22  ;;  %v498_v57 = vld [vmem:[#allocation5 + $0xc70] sm:$0xff]  ;;  %v495_v22 = vld [vmem:[#allocation5 + $0xc58] sm:$0xff] }
 0x201   :  { %3642 = vmatprep.subr.bf16.mxu0 %v4922_v24  ;;  %3806 = vmatprep.subr.bf16.mxu1 %v4924_v26  ;;  %v499_v24 = vld [vmem:[#allocation5 + $0xc78] sm:$0xff]  ;;  %v4977_v26 = vcombine.low %v486_v13, %v490_v14  ;;  %v4986_v27 = vcombine.high %v494_v21, %v498_v57 }
 0x202   :  { %v4988_v28 = vcombine.high %v495_v22, %v499_v24  ;;  %v4987_v35 = vcombine.low %v495_v22, %v499_v24  ;;  %v554_v22 = vld [vmem:[#allocation5 + $0xe30] sm:$0xff]  ;;  %v551_v24 = vld [vmem:[#allocation5 + $0xe18] sm:$0xff] }
 0x204   :  { %3643 = vmatpush1.bf16.msra.mxu0 %v4921_v30  ;;  %3807 = vmatpush1.bf16.msra.mxu1 %v4923_v31  ;;  %v506_v30 = vld [vmem:[#allocation5 + $0xcb0] sm:$0xff]  ;;  %v503_v31 = vld [vmem:[#allocation5 + $0xc98] sm:$0xff] }
 0x205   :  { %3644 = vmatprep.subr.bf16.mxu0 %v4930_v32  ;;  %3808 = vmatprep.subr.bf16.mxu1 %v4932_v33  ;;  %v507_v32 = vld [vmem:[#allocation5 + $0xcb8] sm:$0xff]  ;;  %v4985_v33 = vcombine.low %v494_v21, %v498_v57  ;;  %v4994_v37 = vcombine.high %v502_v29, %v506_v30  ;;  %v550_v57 = vld [vmem:[#allocation5 + $0xe10] sm:$0xff] }
 0x206   :  { %v4996_v25 = vcombine.high %v503_v31, %v507_v32 }
 0x208   :  { %3645 = vmatpush1.bf16.msra.mxu0 %v4929_v38  ;;  %3809 = vmatpush1.bf16.msra.mxu1 %v4931_v39  ;;  %v514_v38 = vld [vmem:[#allocation5 + $0xcf0] sm:$0xff]  ;;  %v511_v39 = vld [vmem:[#allocation5 + $0xcd8] sm:$0xff] }
 0x209   :  { %3646 = vmatprep.subr.bf16.mxu0 %v4938_v40  ;;  %3810 = vmatprep.subr.bf16.mxu1 %v4940_v41  ;;  %v515_v40 = vld [vmem:[#allocation5 + $0xcf8] sm:$0xff]  ;;  %v4993_v41 = vcombine.low %v502_v29, %v506_v30  ;;  %v5002_v42 = vcombine.high %v510_v23, %v514_v38  ;;  %v558_v30 = vld [vmem:[#allocation5 + $0xe50] sm:$0xff] }
 0x20a   :  { %v5004_v43 = vcombine.high %v511_v39, %v515_v40 }
 0x20c   :  { %3647 = vmatpush1.bf16.msra.mxu0 %v4937_v34  ;;  %3811 = vmatpush1.bf16.msra.mxu1 %v4939_v47  ;;  %v519_v34 = vld [vmem:[#allocation5 + $0xd18] sm:$0xff] }
 0x20d   :  { %3648 = vmatprep.subr.bf16.mxu0 %v4946_v48  ;;  %3812 = vmatprep.subr.bf16.mxu1 %v4948_v49  ;;  %v523_v47 = vld [vmem:[#allocation5 + $0xd38] sm:$0xff]  ;;  %v5001_v48 = vcombine.low %v510_v23, %v514_v38  ;;  %v5003_v49 = vcombine.low %v511_v39, %v515_v40  ;;  %v566_v38 = vld [vmem:[#allocation5 + $0xe90] sm:$0xff] }
 0x20e   :  { %v570_v39 = vld [vmem:[#allocation5 + $0xeb0] sm:$0xff]  ;;  %v567_v40 = vld [vmem:[#allocation5 + $0xe98] sm:$0xff] }
 0x210   :  { %3649 = vmatpush1.bf16.msra.mxu0 %v4945_v55  ;;  %3813 = vmatpush1.bf16.msra.mxu1 %v4947_v56  ;;  %v531_v55 = vld [vmem:[#allocation5 + $0xd78] sm:$0xff]  ;;  %v5009_v56 = vcombine.low %v518_v44, %v522_v45  ;;  %v574_v45 = vld [vmem:[#allocation5 + $0xed0] sm:$0xff] }
 0x211   :  { %3650 = vmatprep.subr.bf16.mxu0 %v4954_v58  ;;  %3814 = vmatprep.subr.bf16.mxu1 %v4956_v59  ;;  %v5011_v58 = vcombine.low %v519_v34, %v523_v47  ;;  %v5018_v59 = vcombine.high %v526_v51, %v530_v52  ;;  %v5020_v60 = vcombine.high %v527_v53, %v531_v55 }
 0x214   :  { %3651 = vmatpush1.bf16.msra.mxu0 %v4953_v0  ;;  %3815 = vmatpush1.bf16.msra.mxu1 %v4955_v1  ;;  %v539_v0 = vld [vmem:[#allocation5 + $0xdb8] sm:$0xff]  ;;  %v5017_v1 = vcombine.low %v526_v51, %v530_v52  ;;  %v582_v52 = vld [vmem:[#allocation5 + $0xf10] sm:$0xff] }
 0x215   :  { %3652 = vmatprep.subr.bf16.mxu0 %v4962_v2  ;;  %3816 = vmatprep.subr.bf16.mxu1 %v4964_v3  ;;  %v5019_v2 = vcombine.low %v527_v53, %v531_v55  ;;  %v5026_v3 = vcombine.high %v534_v61, %v538_v62  ;;  %v5028_v5 = vcombine.high %v535_v63, %v539_v0  ;;  %v586_v53 = vld [vmem:[#allocation5 + $0xf30] sm:$0xff]  ;;  %v583_v55 = vld [vmem:[#allocation5 + $0xf18] sm:$0xff] }
 0x216   :  { %v590_v62 = vld [vmem:[#allocation5 + $0xf50] sm:$0xff] }
 0x218   :  { %3653 = vmatpush1.bf16.msra.mxu0 %v4961_v8  ;;  %3817 = vmatpush1.bf16.msra.mxu1 %v4963_v9 }
 0x219   :  { %3654 = vmatprep.subr.bf16.mxu0 %v4970_v10  ;;  %3818 = vmatprep.subr.bf16.mxu1 %v4972_v11  ;;  %v543_v10 = vld [vmem:[#allocation5 + $0xdd8] sm:$0xff] }
 0x21a   :  { %v547_v11 = vld [vmem:[#allocation5 + $0xdf8] sm:$0xff] }
 0x21b   :  { %v5036_v21 = vcombine.high %v543_v10, %v547_v11 }
 0x21c   :  { %3655 = vmatpush1.bf16.msra.mxu0 %v4969_v17  ;;  %3819 = vmatpush1.bf16.msra.mxu1 %v4971_v18  ;;  %v5027_v18 = vcombine.low %v535_v63, %v539_v0  ;;  %v594_v63 = vld [vmem:[#allocation5 + $0xf70] sm:$0xff]  ;;  %v614_v0 = vlaneseq }
 0x21d   :  { %3665 = vmatprep.subr.bf16.mxu0 %v4978_v19  ;;  %3829 = vmatprep.subr.bf16.mxu1 %v4980_v20  ;;  %v5034_v19 = vcombine.high %v542_v6, %v546_v7 }
 0x21f   :  { %3657 = vmatmul.mubr.bf16.vlgmr.msra.gmra.mrb[4].mxu0 %v5648_v36  ;;  %3821 = vmatmul.mubr.bf16.vlgmr.msra.gmra.mrb[4].mxu1 %v5648_v36  ;;  %v4995_v36 = vcombine.low %v503_v31, %v507_v32  ;;  %v562_v31 = vld [vmem:[#allocation5 + $0xe70] sm:$0xff]  ;;  %v559_v32 = vld [vmem:[#allocation5 + $0xe58] sm:$0xff] }
 0x220   :  { %3666 = vmatpush1.bf16.msra.mxu0 %v4977_v26  ;;  %3830 = vmatpush1.bf16.msra.mxu1 %v4979_v12  ;;  %v555_v26 = vld [vmem:[#allocation5 + $0xe38] sm:$0xff]  ;;  %v5033_v12 = vcombine.low %v542_v6, %v546_v7  ;;  %v5082_v6 = vcombine.high %v590_v62, %v594_v63 }
 0x221   :  { %3667 = vmatprep.subr.bf16.mxu0 %v4986_v27  ;;  %3831 = vmatprep.subr.bf16.mxu1 %v4988_v28  ;;  %v5035_v27 = vcombine.low %v543_v10, %v547_v11  ;;  %v5042_v28 = vcombine.high %v550_v57, %v554_v22  ;;  %v5044_v29 = vcombine.high %v551_v24, %v555_v26  ;;  %v598_v10 = vld [vmem:[#allocation5 + $0xf90] sm:$0xff] }
 0x222   :  { %3697 = vmatprep.mubr.bf16.mxu0 %v5650_v46  ;;  %3861 = vmatprep.mubr.bf16.mxu1 %v5650_v46  ;;  %v5012_v46 = vcombine.high %v519_v34, %v523_v47  ;;  %v578_v34 = vld [vmem:[#allocation5 + $0xef0] sm:$0xff]  ;;  %v575_v47 = vld [vmem:[#allocation5 + $0xed8] sm:$0xff] }
 0x223   :  { %v602_v11 = vld [vmem:[#allocation5 + $0xfb0] sm:$0xff] }
 0x224   :  { %3668 = vmatpush1.bf16.msra.mxu0 %v4985_v33  ;;  %3832 = vmatpush1.bf16.msra.mxu1 %v4987_v35  ;;  %v563_v33 = vld [vmem:[#allocation5 + $0xe78] sm:$0xff]  ;;  %v5041_v35 = vcombine.low %v550_v57, %v554_v22  ;;  %v610_v57 = vld [vmem:[#allocation5 + $0xff0] sm:$0xff] }
 0x225   :  { %3669 = vmatprep.subr.bf16.mxu0 %v4994_v37  ;;  %3833 = vmatprep.subr.bf16.mxu1 %v4996_v25  ;;  %v5043_v37 = vcombine.low %v551_v24, %v555_v26  ;;  %v5050_v25 = vcombine.high %v558_v30, %v562_v31  ;;  %v5052_v23 = vcombine.high %v559_v32, %v563_v33  ;;  %v607_v24 = vld [vmem:[#allocation5 + $0xfd8] sm:$0xff] }
 0x226   :  { %v611_v26 = vld [vmem:[#allocation5 + $0xff8] sm:$0xff] }
 0x228   :  { %3670 = vmatpush1.bf16.msra.mxu0 %v4993_v41  ;;  %3834 = vmatpush1.bf16.msra.mxu1 %v4995_v36  ;;  %v571_v41 = vld [vmem:[#allocation5 + $0xeb8] sm:$0xff]  ;;  %v5049_v36 = vcombine.low %v558_v30, %v562_v31  ;;  %v5100_v31 = vcombine.high %v607_v24, %v611_v26 }
 0x229   :  { %3671 = vmatprep.subr.bf16.mxu0 %v5002_v42  ;;  %3835 = vmatprep.subr.bf16.mxu1 %v5004_v43  ;;  %v5051_v42 = vcombine.low %v559_v32, %v563_v33  ;;  %v5058_v43 = vcombine.high %v566_v38, %v570_v39  ;;  %v5060_v44 = vcombine.high %v567_v40, %v571_v41 }
 0x22c   :  { %3672 = vmatpush1.bf16.msra.mxu0 %v5001_v48  ;;  %3836 = vmatpush1.bf16.msra.mxu1 %v5003_v49  ;;  %v579_v48 = vld [vmem:[#allocation5 + $0xef8] sm:$0xff]  ;;  %v5057_v49 = vcombine.low %v566_v38, %v570_v39 }
 0x22d   :  { %3673 = vmatprep.subr.bf16.mxu0 %v5010_v50  ;;  %3837 = vmatprep.subr.bf16.mxu1 %v5012_v46  ;;  %v5059_v50 = vcombine.low %v567_v40, %v571_v41  ;;  %v5066_v46 = vcombine.high %v574_v45, %v578_v34  ;;  %v5068_v51 = vcombine.high %v575_v47, %v579_v48  ;;  %v5322_v40 = vld [vmem:[#allocation8] sm:$0xff]  }
 0x22e   :  { %v5323_v41 = vld [vmem:[#allocation8 + $0x80] sm:$0xff]  }
 0x230   :  { %3674 = vmatpush1.bf16.msra.mxu0 %v5009_v56  ;;  %3838 = vmatpush1.bf16.msra.mxu1 %v5011_v58  ;;  %v587_v56 = vld [vmem:[#allocation5 + $0xf38] sm:$0xff]  ;;  %v5065_v58 = vcombine.low %v574_v45, %v578_v34  ;;  %v5326_v45 = vld [vmem:[#allocation8 + $0x8] sm:$0xff]  }
 0x231   :  { %3675 = vmatprep.subr.bf16.mxu0 %v5018_v59  ;;  %3839 = vmatprep.subr.bf16.mxu1 %v5020_v60  ;;  %v5067_v59 = vcombine.low %v575_v47, %v579_v48  ;;  %v5074_v60 = vcombine.high %v582_v52, %v586_v53  ;;  %v5076_v61 = vcombine.high %v583_v55, %v587_v56  ;;  %v5329_v34 = vld [vmem:[#allocation8 + $0xd0] sm:$0xff]  }
 0x232   :  { %v5674_v4 = vpop.f32.mrb[0].mxu0  ;;  %v5676_v8 = vpop.f32.mrb[0].mxu1  ;;  %v5330_v47 = vld [vmem:[#allocation8 + $0x10] sm:$0xff]  }
 0x233   :  { %v5678_v9 = vpop.f32.mrb[1].mxu0  ;;  %v5680_v13 = vpop.f32.mrb[1].mxu1  ;;  %v5331_v48 = vld [vmem:[#allocation8 + $0x90] sm:$0xff]  }
 0x234   :  { %v3375_v14 = vpop.f32.mrb[2].mxu0  ;;  %3676 = vmatpush1.bf16.msra.mxu0 %v5017_v1  ;;  %v3539_v16 = vpop.f32.mrb[2].mxu1  ;;  %3840 = vmatpush1.bf16.msra.mxu1 %v5019_v2  ;;  %v591_v1 = vld [vmem:[#allocation5 + $0xf58] sm:$0xff] }
 0x235   :  { %v3376_v17 = vpop.f32.mrb[3].mxu0  ;;  %3677 = vmatprep.subr.bf16.mxu0 %v5026_v3  ;;  %v3540_v20 = vpop.f32.mrb[3].mxu1  ;;  %3841 = vmatprep.subr.bf16.mxu1 %v5028_v5  ;;  %v595_v2 = vld [vmem:[#allocation5 + $0xf78] sm:$0xff]  ;;  %v5073_v3 = vcombine.low %v582_v52, %v586_v53  ;;  %v5075_v5 = vcombine.low %v583_v55, %v587_v56  ;;  %v5683_v14 = vshrl.u32 %v614_v0, 7  ;;  %v5337_v52 = vld [vmem:[#allocation8 + $0xe0] sm:$0xff]   ;;  %v5340_v56 = vld [vmem:[#allocation8 + $0x68] sm:$0xff]  }
 0x236   :  { %v5084_v7 = vcombine.high %v591_v1, %v595_v2  ;;  %v603_v16 = vld [vmem:[#allocation5 + $0xfb8] sm:$0xff]  ;;  %v5081_v17 = vcombine.low %v590_v62, %v594_v63  ;;  %v5338_v53 = vld [vmem:[#allocation8 + $0x20] sm:$0xff]  }
 0x237   :  { %v620_v22 = vsub.s32 1, %v5683_v14  ;;  %v5339_v55 = vld [vmem:[#allocation8 + $0xa0] sm:$0xff]   ;;  %v5344_v62 = vld [vmem:[#allocation8 + $0x70] sm:$0xff]   ;;  %v624_v63 = vsub.s32 2, %v5683_v14 }
 0x238   :  { %3678 = vmatpush1.bf16.msra.mxu0 %v5025_v15  ;;  %3842 = vmatpush1.bf16.msra.mxu1 %v5027_v18  ;;  %v599_v15 = vld [vmem:[#allocation5 + $0xf98] sm:$0xff]  ;;  %v5083_v18 = vcombine.low %v591_v1, %v595_v2 }
 0x239   :  { %3679 = vmatprep.subr.bf16.mxu0 %v5034_v19  ;;  %3843 = vmatprep.subr.bf16.mxu1 %v5036_v21  ;;  %v5090_v19 = vcombine.high %v598_v10, %v602_v11  ;;  %v5092_v20 = vcombine.high %v599_v15, %v603_v16  ;;  %v606_v21 = vld [vmem:[#allocation5 + $0xfd0] sm:$0xff]  ;;  %v5345_v1 = vld [vmem:[#allocation8 + $0xf0] sm:$0xff]  }
 0x23a   :  { %v5098_v30 = vcombine.high %v606_v21, %v610_v57  ;;  %v5346_v2 = vld [vmem:[#allocation8 + $0x30] sm:$0xff]  }
 0x23c   :  { %3680 = vmatpush1.bf16.msra.mxu0 %v5033_v12  ;;  %3844 = vmatpush1.bf16.msra.mxu1 %v5035_v27  ;;  %v5686_v12 = vld [vmem:[#allocation7] sm:$0xff]  ;;  %v628_v27 = vsub.s32 3, %v5683_v14 }
 0x23d   :  { %3681 = vmatprep.subr.bf16.mxu0 %v5042_v28  ;;  %3845 = vmatprep.subr.bf16.mxu1 %v5044_v29  ;;  %v5089_v28 = vcombine.low %v598_v10, %v602_v11  ;;  %v5091_v29 = vcombine.low %v599_v15, %v603_v16  ;;  %v621_v32 = vrot.slane %v5686_v12, %v620_v22  ;;  %v5349_v10 = vld [vmem:[#allocation8 + $0xf8] sm:$0xff]   ;;  %v5356_v22 = vld [vmem:[#allocation8 + $0x148] sm:$0xff]  }
 0x23e   :  { %v629_v33 = vrot.slane %v5686_v12, %v628_v27  ;;  %v5350_v11 = vld [vmem:[#allocation8 + $0x38] sm:$0xff]   ;;  %v5359_v27 = vld [vmem:[#allocation8 + $0x188] sm:$0xff]  }
 0x23f   :  { %v5255_v38 = vadd.f32 %v5678_v9, %v621_v32  ;;  %v5327_v9 = vld [vmem:[#allocation8 + $0x88] sm:$0xff]   ;;  %v5351_v16 = vld [vmem:[#allocation8 + $0xb8] sm:$0xff]  }
 0x240   :  { %3682 = vmatpush1.bf16.msra.mxu0 %v5041_v35  ;;  %3846 = vmatpush1.bf16.msra.mxu1 %v5043_v37  ;;  %v5097_v35 = vcombine.low %v606_v21, %v610_v57  ;;  %v5099_v37 = vcombine.low %v607_v24, %v611_v26  ;;  %v5257_v39 = vadd.f32 %v5680_v13, %v629_v33  ;;  %v5328_v13 = vld [vmem:[#allocation8 + $0x50] sm:$0xff]   ;;  %v5355_v57 = vld [vmem:[#allocation8 + $0x180] sm:$0xff]   ;;  %v5357_v26 = vld [vmem:[#allocation8 + $0x1c8] sm:$0xff]  }
 0x241   :  { %3683 = vmatprep.subr.bf16.mxu0 %v5050_v25  ;;  %3847 = vmatprep.subr.bf16.mxu1 %v5052_v23  ;;  %v5320_v25 = vld [vmem:[#allocation8 + $0x40] sm:$0xff]   ;;  %v5365_v32 = vld [vmem:[#allocation8 + $0x1d8] sm:$0xff]  }
 0x242   :  { %v5321_v23 = vld [vmem:[#allocation8 + $0xc0] sm:$0xff]   ;;  %v5366_v33 = vld [vmem:[#allocation8 + $0x118] sm:$0xff]  }
 0x244   :  { %3684 = vmatpush1.bf16.msra.mxu0 %v5049_v36  ;;  %3848 = vmatpush1.bf16.msra.mxu1 %v5051_v42  ;;  %v5324_v36 = vld [vmem:[#allocation8 + $0x48] sm:$0xff]   ;;  %v3871_v42 = vpack.c.bf16 %v5255_v38, %v5255_v38  ;;  %v5371_v38 = vld [vmem:[#allocation8 + $0x1a0] sm:$0xff]  }
 0x245   :  { %3685 = vmatprep.subr.bf16.mxu0 %v5058_v43  ;;  %3849 = vmatprep.subr.bf16.mxu1 %v5060_v44  ;;  %v5325_v43 = vld [vmem:[#allocation8 + $0xc8] sm:$0xff]   ;;  %v3873_v44 = vpack.c.bf16 %v5257_v39, %v5257_v39 }
 0x246   :  { %v5372_v39 = vld [vmem:[#allocation8 + $0x168] sm:$0xff]  }
 0x248   :  { %3686 = vmatpush1.bf16.msra.mxu0 %v5057_v49  ;;  %3850 = vmatpush1.bf16.msra.mxu1 %v5059_v50  ;;  %v5332_v49 = vld [vmem:[#allocation8 + $0x58] sm:$0xff]  }
 0x249   :  { %3687 = vmatprep.subr.bf16.mxu0 %v5066_v46  ;;  %3851 = vmatprep.subr.bf16.mxu1 %v5068_v51  ;;  %v5333_v50 = vld [vmem:[#allocation8 + $0xd8] sm:$0xff]   ;;  %v5336_v51 = vld [vmem:[#allocation8 + $0x60] sm:$0xff]  }
 0x24a   :  { %v5335_v46 = vld [vmem:[#allocation8 + $0x98] sm:$0xff]  }
 0x24c   :  { %3688 = vmatpush1.bf16.msra.mxu0 %v5065_v58  ;;  %3852 = vmatpush1.bf16.msra.mxu1 %v5067_v59  ;;  %v5341_v58 = vld [vmem:[#allocation8 + $0xe8] sm:$0xff]  }
 0x24d   :  { %3689 = vmatprep.subr.bf16.mxu0 %v5074_v60  ;;  %3853 = vmatprep.subr.bf16.mxu1 %v5076_v61  ;;  %v5342_v59 = vld [vmem:[#allocation8 + $0x28] sm:$0xff]   ;;  %v616_v60 = vsub.s32 0, %v5683_v14 }
 0x24e   :  { %v5343_v61 = vld [vmem:[#allocation8 + $0xa8] sm:$0xff]  }
 0x250   :  { %3690 = vmatpush1.bf16.msra.mxu0 %v5073_v3  ;;  %3854 = vmatpush1.bf16.msra.mxu1 %v5075_v5  ;;  %v617_v3 = vrot.slane %v5686_v12, %v616_v60  ;;  %v5347_v5 = vld [vmem:[#allocation8 + $0xb0] sm:$0xff]  }
 0x251   :  { %3691 = vmatprep.subr.bf16.mxu0 %v5082_v6  ;;  %3855 = vmatprep.subr.bf16.mxu1 %v5084_v7  ;;  %v5348_v6 = vld [vmem:[#allocation8 + $0x78] sm:$0xff]   ;;  %v625_v7 = vrot.slane %v5686_v12, %v624_v63 }
 0x252   :  { %v5254_v15 = vadd.f32 %v5674_v4, %v617_v3  ;;  %v5358_v4 = vld [vmem:[#allocation8 + $0x108] sm:$0xff]  }
 0x254   :  { %3692 = vmatpush1.bf16.msra.mxu0 %v5081_v17  ;;  %3856 = vmatpush1.bf16.msra.mxu1 %v5083_v18  ;;  %v5352_v17 = vld [vmem:[#allocation8 + $0x140] sm:$0xff]   ;;  %v5256_v18 = vadd.f32 %v5676_v8, %v625_v7  ;;  %v3870_v21 = vpack.c.bf16 %v5254_v15, %v5254_v15  ;;  %v5360_v8 = vld [vmem:[#allocation8 + $0x150] sm:$0xff]  }
 0x255   :  { %3693 = vmatprep.subr.bf16.mxu0 %v5090_v19  ;;  %3857 = vmatprep.subr.bf16.mxu1 %v5092_v20  ;;  %v5353_v19 = vld [vmem:[#allocation8 + $0x1c0] sm:$0xff]  }
 0x256   :  { %v5354_v20 = vld [vmem:[#allocation8 + $0x100] sm:$0xff]   ;;  %v3872_v24 = vpack.c.bf16 %v5256_v18, %v5256_v18 }
 0x257   :  { %v5101_v15 = vld [vmem:[#allocation10] ss:$0 sm:$0xff] }
 0x258   :  { %3694 = vmatpush1.bf16.msra.mxu0 %v5089_v28  ;;  %3858 = vmatpush1.bf16.msra.mxu1 %v5091_v29  ;;  %v5361_v28 = vld [vmem:[#allocation8 + $0x1d0] sm:$0xff]  }
 0x259   :  { %3695 = vmatprep.subr.bf16.mxu0 %v5098_v30  ;;  %3859 = vmatprep.subr.bf16.mxu1 %v5100_v31  ;;  %v5362_v29 = vld [vmem:[#allocation8 + $0x110] sm:$0xff]   ;;  %v5364_v31 = vld [vmem:[#allocation8 + $0x158] sm:$0xff]  }
 0x25a   :  { %v5363_v30 = vld [vmem:[#allocation8 + $0x190] sm:$0xff]  }
 0x25c   :  { %3696 = vmatpush1.bf16.msra.mxu0 %v5097_v35  ;;  %3860 = vmatpush1.bf16.msra.mxu1 %v5099_v37  ;;  %v5367_v35 = vld [vmem:[#allocation8 + $0x198] sm:$0xff]   ;;  %v5368_v37 = vld [vmem:[#allocation8 + $0x160] sm:$0xff]  }
 0x25d   :  { %5166 = vmatprep.subr.bf16.mxu0 %v5320_v25  ;;  %5188 = vmatprep.subr.bf16.mxu1 %v5321_v23  ;;  %v5369_v25 = vld [vmem:[#allocation8 + $0x1e0] sm:$0xff]  }
 0x25e   :  { %v5370_v23 = vld [vmem:[#allocation8 + $0x120] sm:$0xff]  }
 0x25f   :  { %3698 = vmatmul.mubr.bf16.vlgmr.msra.gmra.mrb[4].mxu0 %v5656_v54  ;;  %3862 = vmatmul.mubr.bf16.vlgmr.msra.gmra.mrb[4].mxu1 %v5656_v54  ;;  %v5334_v54 = vld [vmem:[#allocation8 + $0x18] sm:$0xff]  }
 0x260   :  { %5167 = vmatpush3.bf16.msra.mxu0 %v5322_v40  ;;  %4429 = vmatprep.mubr.bf16.mxu0 %v3871_v42  ;;  %v5373_v40 = vld [vmem:[#allocation8 + $0x1e8] sm:$0xff]   ;;  %v5376_v42 = vld [vmem:[#allocation8 + $0x170] sm:$0xff]  }
 0x261   :  { %5189 = vmatpush3.bf16.msra.mxu1 %v5323_v41  ;;  %4469 = vmatprep.mubr.bf16.mxu1 %v3873_v44  ;;  %v5374_v41 = vld [vmem:[#allocation8 + $0x128] sm:$0xff]   ;;  %v5378_v44 = vld [vmem:[#allocation8 + $0x130] sm:$0xff]  }
 0x262   :  { %5168 = vmatprep.subr.bf16.mxu0 %v5324_v36  ;;  %5190 = vmatprep.subr.bf16.mxu1 %v5325_v43  ;;  %v5375_v36 = vld [vmem:[#allocation8 + $0x1a8] sm:$0xff]   ;;  %v5377_v43 = vld [vmem:[#allocation8 + $0x1f0] sm:$0xff]  }
 0x264   :  { %5169 = vmatpush3.bf16.msra.mxu0 %v5326_v45  ;;  %v5379_v45 = vld [vmem:[#allocation8 + $0x1b0] sm:$0xff]  }
 0x265   :  { %5191 = vmatpush3.bf16.msra.mxu1 %v5327_v9  ;;  %5170 = vmatprep.subr.bf16.mxu0 %v5328_v13  ;;  %v5380_v9 = vld [vmem:[#allocation8 + $0x178] sm:$0xff]  }
 0x266   :  { %5192 = vmatprep.subr.bf16.mxu1 %v5329_v34  ;;  %v5381_v13 = vld [vmem:[#allocation8 + $0x1f8] sm:$0xff]  }
 0x267   :  { %v5382_v34 = vld [vmem:[#allocation8 + $0x138] sm:$0xff]  }
 0x268   :  { %5171 = vmatpush3.bf16.msra.mxu0 %v5330_v47  ;;  %v5383_v47 = vld [vmem:[#allocation8 + $0x1b8] sm:$0xff]  }
 0x269   :  { %5193 = vmatpush3.bf16.msra.mxu1 %v5331_v48  ;;  %5172 = vmatprep.subr.bf16.mxu0 %v5332_v49  ;;  %v632_v48 = vsub.s32 4, %v5683_v14  ;;  %v640_v49 = vsub.s32 6, %v5683_v14 }
 0x26a   :  { %5194 = vmatprep.subr.bf16.mxu1 %v5333_v50  ;;  %v636_v50 = vsub.s32 5, %v5683_v14 }
 0x26c   :  { %5173 = vmatpush3.bf16.msra.mxu0 %v5334_v54  ;;  %v644_v54 = vsub.s32 7, %v5683_v14 }
 0x26d   :  { %5195 = vmatpush3.bf16.msra.mxu1 %v5335_v46  ;;  %5174 = vmatprep.subr.bf16.mxu0 %v5336_v51  ;;  %v633_v46 = vrot.slane %v5686_v12, %v632_v48  ;;  %v641_v51 = vrot.slane %v5686_v12, %v640_v49 }
 0x26e   :  { %5196 = vmatprep.subr.bf16.mxu1 %v5337_v52  ;;  %v637_v52 = vrot.slane %v5686_v12, %v636_v50 }
 0x270   :  { %5175 = vmatpush3.bf16.msra.mxu0 %v5338_v53  ;;  %v645_v53 = vrot.slane %v5686_v12, %v644_v54 }
 0x271   :  { %5197 = vmatpush3.bf16.msra.mxu1 %v5339_v55  ;;  %5176 = vmatprep.subr.bf16.mxu0 %v5340_v56 }
 0x272   :  { %5198 = vmatprep.subr.bf16.mxu1 %v5341_v58 }
 0x274   :  { %5177 = vmatpush3.bf16.msra.mxu0 %v5342_v59 }
 0x275   :  { %5199 = vmatpush3.bf16.msra.mxu1 %v5343_v61  ;;  %5178 = vmatprep.subr.bf16.mxu0 %v5344_v62 }
 0x276   :  { %5200 = vmatprep.subr.bf16.mxu1 %v5345_v1 }
 0x278   :  { %5179 = vmatpush3.bf16.msra.mxu0 %v5346_v2 }
 0x279   :  { %5201 = vmatpush3.bf16.msra.mxu1 %v5347_v5  ;;  %5180 = vmatprep.subr.bf16.mxu0 %v5348_v6 }
 0x27a   :  { %5202 = vmatprep.subr.bf16.mxu1 %v5349_v10 }
 0x27c   :  { %5181 = vmatpush3.bf16.msra.mxu0 %v5350_v11 }
 0x27d   :  { %5203 = vmatpush3.bf16.msra.mxu1 %v5351_v16  ;;  %5210 = vmatprep.subr.bf16.mxu0 %v5352_v17 }
 0x27e   :  { %5232 = vmatprep.subr.bf16.mxu1 %v5353_v19 }
 0x27f   :  { %4430 = vmatmul.mubr.bf16.vlgmr.msra.gmra.mrb[8].mxu0 %v3870_v21 }
 0x280   :  { %4470 = vmatmul.mubr.bf16.vlgmr.msra.gmra.mrb[8].mxu1 %v3872_v24  ;;  %5211 = vmatpush3.bf16.msra.mxu0 %v5354_v20 }
 0x281   :  { %5233 = vmatpush3.bf16.msra.mxu1 %v5355_v57  ;;  %5212 = vmatprep.subr.bf16.mxu0 %v5356_v22 }
 0x282   :  { %5234 = vmatprep.subr.bf16.mxu1 %v5357_v26 }
 0x284   :  { %5213 = vmatpush3.bf16.msra.mxu0 %v5358_v4 }
 0x285   :  { %5235 = vmatpush3.bf16.msra.mxu1 %v5359_v27  ;;  %5214 = vmatprep.subr.bf16.mxu0 %v5360_v8 }
 0x286   :  { %5236 = vmatprep.subr.bf16.mxu1 %v5361_v28  ;;  %v4558_v28 = vand.u32 127, %v614_v0 }
 0x288   :  { %5215 = vmatpush3.bf16.msra.mxu0 %v5362_v29  ;;  %vm4559_vm0 = vcmp.lt.s32.totalorder %v4558_v28, 10 }
 0x289   :  { %5237 = vmatpush3.bf16.msra.mxu1 %v5363_v30  ;;  %5216 = vmatprep.subr.bf16.mxu0 %v5364_v31 }
 0x28a   :  { %5238 = vmatprep.subr.bf16.mxu1 %v5365_v32 }
 0x28c   :  { %5217 = vmatpush3.bf16.msra.mxu0 %v5366_v33 }
 0x28d   :  { %5239 = vmatpush3.bf16.msra.mxu1 %v5367_v35  ;;  %5218 = vmatprep.subr.bf16.mxu0 %v5368_v37 }
 0x28e   :  { %5240 = vmatprep.subr.bf16.mxu1 %v5369_v25 }
 0x290   :  { %5219 = vmatpush3.bf16.msra.mxu0 %v5370_v23 }
 0x291   :  { %5241 = vmatpush3.bf16.msra.mxu1 %v5371_v38  ;;  %5220 = vmatprep.subr.bf16.mxu0 %v5372_v39 }
 0x292   :  { %5242 = vmatprep.subr.bf16.mxu1 %v5373_v40 }
 0x294   :  { %5221 = vmatpush3.bf16.msra.mxu0 %v5374_v41 }
 0x295   :  { %5243 = vmatpush3.bf16.msra.mxu1 %v5375_v36  ;;  %5222 = vmatprep.subr.bf16.mxu0 %v5376_v42 }
 0x296   :  { %5244 = vmatprep.subr.bf16.mxu1 %v5377_v43 }
 0x298   :  { %5223 = vmatpush3.bf16.msra.mxu0 %v5378_v44 }
 0x299   :  { %5245 = vmatpush3.bf16.msra.mxu1 %v5379_v45  ;;  %5224 = vmatprep.subr.bf16.mxu0 %v5380_v9 }
 0x29a   :  { %5246 = vmatprep.subr.bf16.mxu1 %v5381_v13 }
 0x29c   :  { %5225 = vmatpush3.bf16.msra.mxu0 %v5382_v34 }
 0x29d   :  { %5247 = vmatpush3.bf16.msra.mxu1 %v5383_v47 }
 0x332   :  { %v3699_v55 = vpop.f32.mrb[4].mxu0  ;;  %v3863_v58 = vpop.f32.mrb[4].mxu1 }
 0x333   :  { %v5258_v56 = vadd.f32 %v3699_v55, %v633_v46  ;;  %v3701_v59 = vpop.f32.mrb[5].mxu0  ;;  %v5260_v60 = vadd.f32 %v3863_v58, %v641_v51  ;;  %v3865_v62 = vpop.f32.mrb[5].mxu1 }
 0x334   :  { %v5259_v61 = vadd.f32 %v3701_v59, %v637_v52  ;;  %v3703_v63 = vpop.f32.mrb[6].mxu0  ;;  %v5261_v1 = vadd.f32 %v3865_v62, %v645_v53  ;;  %v3867_v2 = vpop.f32.mrb[6].mxu1 }
 0x335   :  { %v3704_v3 = vpop.f32.mrb[7].mxu0  ;;  %v3868_v5 = vpop.f32.mrb[7].mxu1  ;;  %v3874_v6 = vpack.c.bf16 %v5258_v56, %v5258_v56  ;;  %v3876_v10 = vpack.c.bf16 %v5260_v60, %v5260_v60 }
 0x336   :  { %v3875_v14 = vpack.c.bf16 %v5259_v61, %v5259_v61  ;;  %v3877_v7 = vpack.c.bf16 %v5261_v1, %v5261_v1 }
 0x338   :  { %4509 = vmatprep.mubr.bf16.mxu0 %v3875_v14  ;;  %4549 = vmatprep.mubr.bf16.mxu1 %v3877_v7 }
 0x339   :  { %4510 = vmatmul.mubr.bf16.vlgmr.msra.gmra.mrb[12].mxu0 %v3874_v6  ;;  %4550 = vmatmul.mubr.bf16.vlgmr.msra.gmra.mrb[12].mxu1 %v3876_v10 }
 0x352   :  { %v5182_v12 = vpop.f32.mrb[8].mxu0 }
 0x353   :  { %v5204_v11 = vpop.f32.mrb[8].mxu1  ;;  %v5183_v16 = vpop.f32.mrb[9].mxu0 }
 0x354   :  { %v5184_v17 = vadd.f32 %v5183_v16, %v5182_v12  ;;  %v5205_v18 = vpop.f32.mrb[9].mxu1  ;;  %v5185_v19 = vpop.f32.mrb[10].mxu0 }
 0x355   :  { %v5206_v20 = vadd.f32 %v5205_v18, %v5204_v11  ;;  %v5207_v21 = vpop.f32.mrb[10].mxu1  ;;  %v5186_v57 = vpop.f32.mrb[11].mxu0 }
 0x356   :  { %v4432_v22 = vadd.f32 %v5184_v17, %v5101_v15  ;;  %v5208_v24 = vpop.f32.mrb[11].mxu1 }
 0x358   :  { %v4472_v26 = vadd.f32 %v5206_v20, %v4432_v22 }
 0x40c   :  { %v5226_v4 = vpop.f32.mrb[12].mxu0  ;;  %v5248_v27 = vpop.f32.mrb[12].mxu1 }
 0x40d   :  { %v5227_v8 = vpop.f32.mrb[13].mxu0  ;;  %v5249_v30 = vpop.f32.mrb[13].mxu1 }
 0x40e   :  { %v5228_v29 = vadd.f32 %v5227_v8, %v5226_v4  ;;  %v5229_v31 = vpop.f32.mrb[14].mxu0  ;;  %v5250_v32 = vadd.f32 %v5249_v30, %v5248_v27  ;;  %v5251_v33 = vpop.f32.mrb[14].mxu1 }
 0x40f   :  { %v5230_v35 = vpop.f32.mrb[15].mxu0  ;;  %v5252_v25 = vpop.f32.mrb[15].mxu1 }
 0x410   :  { %v4512_v37 = vadd.f32 %v5228_v29, %v4472_v26 }
 0x412   :  { %v4552_v23 = vadd.f32 %v5250_v32, %v4512_v37 }
 0x414   :  { %v4560_v38 = vsel %vm4559_vm0, %v4552_v23, -1e+30 }
 0x415   :  { %4561 = vmax.xlane.f32.xlu0 %v4560_v38 }
 0x4a2   :  { %v4562_v39 = vpop.xlane.xlu0 %4561 }
 0x4a3   :  { %v4563_v40 = vsub.f32 %v4560_v38, %v4562_v39 }
 0x4a5   :  { %v4564_v41 = vmul.f32 1.442695, %v4563_v40 }
 0x4a7   :  { %5384 = vpow2.f32 %v4564_v41 }
 0x4b1   :  { %v5385_v36 = vpop.eup %5384 }
 0x4b2   :  { %4566 = vadd.xlane.f32.xlu0 %v5385_v36 }
 0x53f   :  { %v4567_v42 = vpop.xlane.xlu0 %4566 }
 0x540   :  { %5386 = vlog2.f32 %v4567_v42 }
 0x54a   :  { %v5387_v0 = vpop.eup %5386 }
 0x54b   :  { %v4569_v43 = vmul.f32 0.6931472, %v5387_v0 }
 0x54d   :  { %v4570_v44 = vsub.f32 %v4563_v40, %v4569_v43 }
 0x54f   :  { %4571 = vst [vmem:[#allocation11] sm:$0xff] %v4570_v44 }
 0x550   :  { %5509 = shalt.err (!%p5506_p2)
}
 0x551   :  { %s5510_s6 = scalar_lea.hbm %s5727_s5, 128 }
 0x552   :  { %p5511_p3 = scmp.ne.s32.totalorder %s5727_s5, %s5510_s6  ;;  %p5514_p4 = scmp.lt.u32.totalorder %s5510_s6, %s5727_s5 }
 0x554   :  { %p5516_p5 = pnand %p5514_p4, %p5511_p3 }
 0x556   :  { %5519 = shalt.err (!%p5516_p5)
}
 0x557   :  { %4581 = dma.vmem_to_hbm [thread:$0]  %s4579_s28, 128, %s5727_s5, [#allocation4]  }
 0x558   :  { %5526 = dma.done.wait [#allocation4], 128  }
 0x559   :  { %5527 = vsyncadd [#allocation4], 4294967168 }
 0x55a   :  { %4585 = vsyncpa [#allocation3], 1 }
 0x55b   :  { %4586 = vsyncpa [#allocation6], 1 }
 0x55c   :  { %4587 = vsyncpa [#allocation9], 1 }
 0x55d   :  { %4588 = vsyncpa [#allocation4], 1 }

</bundles_post_ra>
